<compile_context>
chip_gen: v6e
topology: v6e:2x2x1
jax: 0.10.0
libtpu: 0.0.40
codegen_flags: <defaults>
</compile_context>

<pallas_src>
import jax
import jax.numpy as jnp
import numpy as np
from jax.experimental import pallas as pl
from jax.experimental.pallas import tpu as pltpu


def _lstm_fc_kernel(x_ref, w_ih_ref, w_hh_ref, b_ref, w_fc_ref, b_fc_ref,
                    out_ref, gx_ref):
    """Whole LSTM forward + final Linear in one gridless invocation.

    Shapes (HP = lane-padded hidden, multiple of 128; gate order (i, f, o, g)):
      x_ref:    (T, B, I)   time-major input, f32
      w_ih_ref: (I, 4*HP)   input->gates, f32 (used on the VPU only)
      w_hh_ref: (HP, 4*HP)  hidden->gates, mxu_dtype (f32 or bf16)
      b_ref:    (1, 4*HP)   b_ih + b_hh, f32 (padding = 0)
      w_fc_ref: (HP, O)     final Linear weight (padded rows = 0), mxu_dtype
      b_fc_ref: (1, O)      f32
      out_ref:  (B, O)      f32
      gx_ref:   (T, B, 4*HP) VMEM scratch: hoisted per-step input projection
    """
    T, B, I = x_ref.shape
    HP = w_hh_ref.shape[0]
    G4 = 4 * HP
    mxu_dtype = w_hh_ref.dtype

    # ---- Hoisted input projection on the VPU (K = I is tiny) --------------
    # gx[t, b, :] = sum_i x[t, b, i] * W_ih[i, :] + (b_ih + b_hh)
    x = x_ref[...]                                              # (T, B, I)
    gx = x[:, :, 0:1] * w_ih_ref[0:1, :] + b_ref[...]           # (T, B, 4*HP)
    for idx in range(1, I):
        gx = gx + x[:, :, idx:idx + 1] * w_ih_ref[idx:idx + 1, :]
    gx_ref[...] = gx                                            # park in VMEM

    # ---- Recurrence (fully unrolled; T is a small static Python int) ------
    h = jnp.zeros((B, HP), jnp.float32)
    c = jnp.zeros((B, HP), jnp.float32)

    for t in range(T):
        # gx_ref[t] is a contiguous, tile-aligned (B, 4*HP) VMEM load.
        # w_hh_ref[...] is read per-step so the 256 KiB RHS stays VMEM-backed
        # (never a live register value) and streams straight into the MXU.
        gates = gx_ref[t] + jnp.dot(h.astype(mxu_dtype), w_hh_ref[...],
                                    preferred_element_type=jnp.float32)
        # Gates packed (i, f, o, g): one contiguous sigmoid sweep + one tanh.
        sig = jax.nn.sigmoid(gates[:, :3 * HP])
        i_g = sig[:, 0 * HP:1 * HP]
        f_g = sig[:, 1 * HP:2 * HP]
        o_g = sig[:, 2 * HP:3 * HP]
        g_g = jnp.tanh(gates[:, 3 * HP:])

        c = f_g * c + i_g * g_g
        h = o_g * jnp.tanh(c)

    # out = fc(h_T). Padded h lanes are exactly 0 and padded W_fc rows are 0,
    # so the lane padding cannot leak into the output.
    out_ref[...] = (jnp.dot(h.astype(w_fc_ref.dtype), w_fc_ref[...],
                            preferred_element_type=jnp.float32)
                    + b_fc_ref[...])


def lstm_model_forward(x, w_ih, w_hh, b_ih, b_hh, w_fc, b_fc,
                       mxu_dtype=jnp.float32):
    """x: (B, T, I) float32 (batch_first, like the PyTorch module).

    PyTorch parameter layout:
      w_ih: (4H, I), w_hh: (4H, H), b_ih/b_hh: (4H,)  gate order (i, f, g, o)
      w_fc: (O, H),  b_fc: (O,)
    mxu_dtype: dtype of the MXU operands for the recurrence / fc matmuls
      (jnp.float32 for exact f32 parity, jnp.bfloat16 for the v6e/v7x fast path).
    """
    B, T, I = x.shape
    H = w_hh.shape[1]
    O = w_fc.shape[0]
    HP = ((H + 127) // 128) * 128          # lane-aligned per-gate slab width
    f32 = jnp.float32

    def split_gates(w):                    # (4H, D) -> i, f, g, o  (PyTorch order)
        return [w[k * H:(k + 1) * H] for k in range(4)]

    def pack_rows(w):                      # (4H, D) -> (4*HP, D), order (i, f, o, g)
        i_w, f_w, g_w, o_w = split_gates(w.astype(f32))
        pad = lambda m: jnp.pad(m, ((0, HP - H), (0, 0)))
        return jnp.concatenate([pad(i_w), pad(f_w), pad(o_w), pad(g_w)], axis=0)

    # Pre-transpose so every in-kernel matmul is a plain row-major jnp.dot.
    w_ih_t = jnp.transpose(pack_rows(w_ih))                         # (I, 4*HP) f32
    w_hh_t = jnp.pad(jnp.transpose(pack_rows(w_hh)),
                     ((0, HP - H), (0, 0))).astype(mxu_dtype)       # (HP, 4*HP)

    b_sum = (b_ih + b_hh).astype(f32)
    i_b, f_b, g_b, o_b = [b_sum[k * H:(k + 1) * H] for k in range(4)]
    padb = lambda v: jnp.pad(v, (0, HP - H))
    b = jnp.concatenate([padb(i_b), padb(f_b), padb(o_b),
                         padb(g_b)]).reshape(1, 4 * HP)             # (1, 4*HP) f32

    w_fc_t = jnp.pad(jnp.transpose(w_fc.astype(f32)),
                     ((0, HP - H), (0, 0))).astype(mxu_dtype)       # (HP, O)
    b_fc_r = b_fc.astype(f32).reshape(1, O)                         # (1, O)

    x_tm = jnp.transpose(x.astype(f32), (1, 0, 2))                  # (T, B, I)

    vmem = pltpu.MemorySpace.VMEM
    return pl.pallas_call(
        _lstm_fc_kernel,
        out_shape=jax.ShapeDtypeStruct((B, O), jnp.float32),
        # Gridless, single invocation: whole arrays live in VMEM, no pipeline
        # prologue/epilogue or double-buffered DMA machinery.
        in_specs=[
            pl.BlockSpec(memory_space=vmem),   # x (time-major)
            pl.BlockSpec(memory_space=vmem),   # W_ih packed (f32, VPU)
            pl.BlockSpec(memory_space=vmem),   # W_hh packed (mxu_dtype)
            pl.BlockSpec(memory_space=vmem),   # b_ih + b_hh
            pl.BlockSpec(memory_space=vmem),   # W_fc^T (mxu_dtype)
            pl.BlockSpec(memory_space=vmem),   # b_fc
        ],
        out_specs=pl.BlockSpec(memory_space=vmem),
        scratch_shapes=[pltpu.VMEM((T, B, 4 * HP), jnp.float32)],   # gx
    )(x_tm, w_ih_t, w_hh_t, b, w_fc_t, b_fc_r)


def _reference_forward(x, w_ih, w_hh, b_ih, b_hh, w_fc, b_fc):
    """Pure-JAX reference replicating torch.nn.LSTM + Linear forward."""
    B, T, I = x.shape
    H = w_hh.shape[1]
    h = jnp.zeros((B, H), jnp.float32)
    c = jnp.zeros((B, H), jnp.float32)
    for t in range(T):
        gates = x[:, t, :] @ w_ih.T + b_ih + h @ w_hh.T + b_hh
        i_g = jax.nn.sigmoid(gates[:, 0 * H:1 * H])
        f_g = jax.nn.sigmoid(gates[:, 1 * H:2 * H])
        g_g = jnp.tanh(gates[:, 2 * H:3 * H])
        o_g = jax.nn.sigmoid(gates[:, 3 * H:4 * H])
        c = f_g * c + i_g * g_g
        h = o_g * jnp.tanh(c)
    return h @ w_fc.T + b_fc


if __name__ == "__main__":
    # Shapes implied by the module: batch_first LSTM on (B, T, input_size=2),
    # hidden_size=50, output_size=len(mojilist) -> pick 10 for this synthetic run.
    B, T, I, H, O = 2, 8, 2, 50, 10

    key = jax.random.PRNGKey(0)
    ks = jax.random.split(key, 7)
    bound = 1.0 / np.sqrt(H)   # PyTorch default U(-1/sqrt(H), 1/sqrt(H))
    w_ih = jax.random.uniform(ks[0], (4 * H, I), jnp.float32, -bound, bound)
    w_hh = jax.random.uniform(ks[1], (4 * H, H), jnp.float32, -bound, bound)
    b_ih = jax.random.uniform(ks[2], (4 * H,), jnp.float32, -bound, bound)
    b_hh = jax.random.uniform(ks[3], (4 * H,), jnp.float32, -bound, bound)
    w_fc = jax.random.uniform(ks[4], (O, H), jnp.float32, -bound, bound)
    b_fc = jax.random.uniform(ks[5], (O,), jnp.float32, -bound, bound)
    x = jax.random.normal(ks[6], (B, T, I), jnp.float32)

    ref = _reference_forward(x, w_ih, w_hh, b_ih, b_hh, w_fc, b_fc)

    # f32 MXU operands: exact parity with the f32 reference.
    out_f32 = lstm_model_forward(x, w_ih, w_hh, b_ih, b_hh, w_fc, b_fc,
                                 mxu_dtype=jnp.float32)
    out_f32 = jax.block_until_ready(out_f32)
    np.testing.assert_allclose(np.asarray(out_f32), np.asarray(ref),
                               rtol=1e-5, atol=1e-5)

    # bf16 MXU operands (v6e/v7x fast path): same kernel, loosened tolerance
    # per the review (gate math / accumulation remain f32).
    out_bf16 = lstm_model_forward(x, w_ih, w_hh, b_ih, b_hh, w_fc, b_fc,
                                  mxu_dtype=jnp.bfloat16)
    out_bf16 = jax.block_until_ready(out_bf16)
    np.testing.assert_allclose(np.asarray(out_bf16), np.asarray(ref),
                               rtol=5e-2, atol=5e-2)

    print("KERNEL_OK")
</pallas_src>

<mosaic_0001>
module attributes {stable_mosaic.version = 11 : i64} {
  func.func @_lstm_fc_kernel(%arg0: memref<8x2x2xf32, #tpu.memory_space<vmem>>, %arg1: memref<2x512xf32, #tpu.memory_space<vmem>>, %arg2: memref<128x512xf32, #tpu.memory_space<vmem>>, %arg3: memref<1x512xf32, #tpu.memory_space<vmem>>, %arg4: memref<128x10xf32, #tpu.memory_space<vmem>>, %arg5: memref<1x10xf32, #tpu.memory_space<vmem>>, %arg6: memref<2x10xf32, #tpu.memory_space<vmem>>, %arg7: memref<8x2x512xf32, #tpu.memory_space<vmem>>) attributes {dimension_semantics = [], scalar_prefetch = 0 : i64, scratch_operands = 1 : i64, tpu.core_type = #tpu.core_type<tc>} {
    %c0 = arith.constant 0 : index
    %c0_0 = arith.constant 0 : index
    %c0_1 = arith.constant 0 : index
    %0 = vector.load %arg0[%c0, %c0_0, %c0_1] : memref<8x2x2xf32, #tpu.memory_space<vmem>>, vector<8x2x2xf32>
    %1 = vector.extract_strided_slice %0 {offsets = [0, 0, 0], sizes = [8, 2, 1], strides = [1, 1, 1]} : vector<8x2x2xf32> to vector<8x2x1xf32>
    %c0_2 = arith.constant 0 : index
    %c0_3 = arith.constant 0 : index
    %2 = vector.load %arg1[%c0_2, %c0_3] : memref<2x512xf32, #tpu.memory_space<vmem>>, vector<1x512xf32>
    %3 = vector.shape_cast %2 : vector<1x512xf32> to vector<1x1x512xf32>
    %4 = vector.broadcast %1 : vector<8x2x1xf32> to vector<8x2x512xf32>
    %5 = vector.broadcast %3 : vector<1x1x512xf32> to vector<8x2x512xf32>
    %6 = arith.mulf %4, %5 : vector<8x2x512xf32>
    %c0_4 = arith.constant 0 : index
    %c0_5 = arith.constant 0 : index
    %7 = vector.load %arg3[%c0_4, %c0_5] : memref<1x512xf32, #tpu.memory_space<vmem>>, vector<1x512xf32>
    %8 = vector.shape_cast %7 : vector<1x512xf32> to vector<1x1x512xf32>
    %9 = vector.broadcast %8 : vector<1x1x512xf32> to vector<8x2x512xf32>
    %10 = arith.addf %6, %9 : vector<8x2x512xf32>
    %11 = vector.extract_strided_slice %0 {offsets = [0, 0, 1], sizes = [8, 2, 1], strides = [1, 1, 1]} : vector<8x2x2xf32> to vector<8x2x1xf32>
    %c1 = arith.constant 1 : index
    %c0_6 = arith.constant 0 : index
    %12 = vector.load %arg1[%c1, %c0_6] : memref<2x512xf32, #tpu.memory_space<vmem>>, vector<1x512xf32>
    %13 = vector.shape_cast %12 : vector<1x512xf32> to vector<1x1x512xf32>
    %14 = vector.broadcast %11 : vector<8x2x1xf32> to vector<8x2x512xf32>
    %15 = vector.broadcast %13 : vector<1x1x512xf32> to vector<8x2x512xf32>
    %16 = arith.mulf %14, %15 : vector<8x2x512xf32>
    %17 = arith.addf %10, %16 : vector<8x2x512xf32>
    %c0_7 = arith.constant 0 : index
    %c0_8 = arith.constant 0 : index
    %c0_9 = arith.constant 0 : index
    %18 = vector.load %arg7[%c0_7, %c0_8, %c0_9] : memref<8x2x512xf32, #tpu.memory_space<vmem>>, vector<8x2x512xf32>
    tpu.vector_store %arg7[%c0_7, %c0_8, %c0_9], %17 {strides = array<i32>} : memref<8x2x512xf32, #tpu.memory_space<vmem>>, vector<8x2x512xf32>,
    %cst = arith.constant 0.000000e+00 : f32
    %19 = vector.broadcast %cst : f32 to vector<2x128xf32>
    %cst_10 = arith.constant 0.000000e+00 : f32
    %20 = vector.broadcast %cst_10 : f32 to vector<2x128xf32>
    %c0_11 = arith.constant 0 : index
    %c0_12 = arith.constant 0 : index
    %c0_13 = arith.constant 0 : index
    %21 = vector.load %arg7[%c0_11, %c0_12, %c0_13] : memref<8x2x512xf32, #tpu.memory_space<vmem>>, vector<1x2x512xf32>
    %22 = vector.shape_cast %21 : vector<1x2x512xf32> to vector<2x512xf32>
    %c0_14 = arith.constant 0 : index
    %c0_15 = arith.constant 0 : index
    %23 = vector.load %arg2[%c0_14, %c0_15] : memref<128x512xf32, #tpu.memory_space<vmem>>, vector<128x512xf32>
    %cst_16 = arith.constant dense<0.000000e+00> : vector<2x512xf32>
    %24 = tpu.matmul %19, %23, %cst_16 {dimension_numbers = #tpu.dot_dimension_numbers<[1], [0], [0], [1], [0, 0, 1, 1], [], []>} : vector<2x128xf32>, vector<128x512xf32>, vector<2x512xf32> -> vector<2x512xf32>
    %25 = arith.addf %22, %24 : vector<2x512xf32>
    %26 = vector.extract_strided_slice %25 {offsets = [0, 0], sizes = [2, 384], strides = [1, 1]} : vector<2x512xf32> to vector<2x384xf32>
    %27 = arith.negf %26 : vector<2x384xf32>
    %28 = math.exp %27 : vector<2x384xf32>
    %cst_17 = arith.constant 1.000000e+00 : f32
    %29 = vector.broadcast %cst_17 : f32 to vector<2x384xf32>
    %30 = arith.addf %29, %28 : vector<2x384xf32>
    %31 = arith.divf %29, %30 : vector<2x384xf32>
    %32 = vector.extract_strided_slice %31 {offsets = [0, 0], sizes = [2, 128], strides = [1, 1]} : vector<2x384xf32> to vector<2x128xf32>
    %33 = vector.extract_strided_slice %31 {offsets = [0, 128], sizes = [2, 128], strides = [1, 1]} : vector<2x384xf32> to vector<2x128xf32>
    %34 = vector.extract_strided_slice %31 {offsets = [0, 256], sizes = [2, 128], strides = [1, 1]} : vector<2x384xf32> to vector<2x128xf32>
    %35 = vector.extract_strided_slice %25 {offsets = [0, 384], sizes = [2, 128], strides = [1, 1]} : vector<2x512xf32> to vector<2x128xf32>
    %36 = math.tanh %35 : vector<2x128xf32>
    %37 = arith.mulf %33, %20 : vector<2x128xf32>
    %38 = arith.mulf %32, %36 : vector<2x128xf32>
    %39 = arith.addf %37, %38 : vector<2x128xf32>
    %40 = math.tanh %39 : vector<2x128xf32>
    %41 = arith.mulf %34, %40 : vector<2x128xf32>
    %c1_18 = arith.constant 1 : index
    %c0_19 = arith.constant 0 : index
    %c0_20 = arith.constant 0 : index
    %42 = vector.load %arg7[%c1_18, %c0_19, %c0_20] : memref<8x2x512xf32, #tpu.memory_space<vmem>>, vector<1x2x512xf32>
    %43 = vector.shape_cast %42 : vector<1x2x512xf32> to vector<2x512xf32>
    %c0_21 = arith.constant 0 : index
    %c0_22 = arith.constant 0 : index
    %44 = vector.load %arg2[%c0_21, %c0_22] : memref<128x512xf32, #tpu.memory_space<vmem>>, vector<128x512xf32>
    %cst_23 = arith.constant dense<0.000000e+00> : vector<2x512xf32>
    %45 = tpu.matmul %41, %44, %cst_23 {dimension_numbers = #tpu.dot_dimension_numbers<[1], [0], [0], [1], [0, 0, 1, 1], [], []>} : vector<2x128xf32>, vector<128x512xf32>, vector<2x512xf32> -> vector<2x512xf32>
    %46 = arith.addf %43, %45 : vector<2x512xf32>
    %47 = vector.extract_strided_slice %46 {offsets = [0, 0], sizes = [2, 384], strides = [1, 1]} : vector<2x512xf32> to vector<2x384xf32>
    %48 = arith.negf %47 : vector<2x384xf32>
    %49 = math.exp %48 : vector<2x384xf32>
    %cst_24 = arith.constant 1.000000e+00 : f32
    %50 = vector.broadcast %cst_24 : f32 to vector<2x384xf32>
    %51 = arith.addf %50, %49 : vector<2x384xf32>
    %52 = arith.divf %50, %51 : vector<2x384xf32>
    %53 = vector.extract_strided_slice %52 {offsets = [0, 0], sizes = [2, 128], strides = [1, 1]} : vector<2x384xf32> to vector<2x128xf32>
    %54 = vector.extract_strided_slice %52 {offsets = [0, 128], sizes = [2, 128], strides = [1, 1]} : vector<2x384xf32> to vector<2x128xf32>
    %55 = vector.extract_strided_slice %52 {offsets = [0, 256], sizes = [2, 128], strides = [1, 1]} : vector<2x384xf32> to vector<2x128xf32>
    %56 = vector.extract_strided_slice %46 {offsets = [0, 384], sizes = [2, 128], strides = [1, 1]} : vector<2x512xf32> to vector<2x128xf32>
    %57 = math.tanh %56 : vector<2x128xf32>
    %58 = arith.mulf %54, %39 : vector<2x128xf32>
    %59 = arith.mulf %53, %57 : vector<2x128xf32>
    %60 = arith.addf %58, %59 : vector<2x128xf32>
    %61 = math.tanh %60 : vector<2x128xf32>
    %62 = arith.mulf %55, %61 : vector<2x128xf32>
    %c2 = arith.constant 2 : index
    %c0_25 = arith.constant 0 : index
    %c0_26 = arith.constant 0 : index
    %63 = vector.load %arg7[%c2, %c0_25, %c0_26] : memref<8x2x512xf32, #tpu.memory_space<vmem>>, vector<1x2x512xf32>
    %64 = vector.shape_cast %63 : vector<1x2x512xf32> to vector<2x512xf32>
    %c0_27 = arith.constant 0 : index
    %c0_28 = arith.constant 0 : index
    %65 = vector.load %arg2[%c0_27, %c0_28] : memref<128x512xf32, #tpu.memory_space<vmem>>, vector<128x512xf32>
    %cst_29 = arith.constant dense<0.000000e+00> : vector<2x512xf32>
    %66 = tpu.matmul %62, %65, %cst_29 {dimension_numbers = #tpu.dot_dimension_numbers<[1], [0], [0], [1], [0, 0, 1, 1], [], []>} : vector<2x128xf32>, vector<128x512xf32>, vector<2x512xf32> -> vector<2x512xf32>
    %67 = arith.addf %64, %66 : vector<2x512xf32>
    %68 = vector.extract_strided_slice %67 {offsets = [0, 0], sizes = [2, 384], strides = [1, 1]} : vector<2x512xf32> to vector<2x384xf32>
    %69 = arith.negf %68 : vector<2x384xf32>
    %70 = math.exp %69 : vector<2x384xf32>
    %cst_30 = arith.constant 1.000000e+00 : f32
    %71 = vector.broadcast %cst_30 : f32 to vector<2x384xf32>
    %72 = arith.addf %71, %70 : vector<2x384xf32>
    %73 = arith.divf %71, %72 : vector<2x384xf32>
    %74 = vector.extract_strided_slice %73 {offsets = [0, 0], sizes = [2, 128], strides = [1, 1]} : vector<2x384xf32> to vector<2x128xf32>
    %75 = vector.extract_strided_slice %73 {offsets = [0, 128], sizes = [2, 128], strides = [1, 1]} : vector<2x384xf32> to vector<2x128xf32>
    %76 = vector.extract_strided_slice %73 {offsets = [0, 256], sizes = [2, 128], strides = [1, 1]} : vector<2x384xf32> to vector<2x128xf32>
    %77 = vector.extract_strided_slice %67 {offsets = [0, 384], sizes = [2, 128], strides = [1, 1]} : vector<2x512xf32> to vector<2x128xf32>
    %78 = math.tanh %77 : vector<2x128xf32>
    %79 = arith.mulf %75, %60 : vector<2x128xf32>
    %80 = arith.mulf %74, %78 : vector<2x128xf32>
    %81 = arith.addf %79, %80 : vector<2x128xf32>
    %82 = math.tanh %81 : vector<2x128xf32>
    %83 = arith.mulf %76, %82 : vector<2x128xf32>
    %c3 = arith.constant 3 : index
    %c0_31 = arith.constant 0 : index
    %c0_32 = arith.constant 0 : index
    %84 = vector.load %arg7[%c3, %c0_31, %c0_32] : memref<8x2x512xf32, #tpu.memory_space<vmem>>, vector<1x2x512xf32>
    %85 = vector.shape_cast %84 : vector<1x2x512xf32> to vector<2x512xf32>
    %c0_33 = arith.constant 0 : index
    %c0_34 = arith.constant 0 : index
    %86 = vector.load %arg2[%c0_33, %c0_34] : memref<128x512xf32, #tpu.memory_space<vmem>>, vector<128x512xf32>
    %cst_35 = arith.constant dense<0.000000e+00> : vector<2x512xf32>
    %87 = tpu.matmul %83, %86, %cst_35 {dimension_numbers = #tpu.dot_dimension_numbers<[1], [0], [0], [1], [0, 0, 1, 1], [], []>} : vector<2x128xf32>, vector<128x512xf32>, vector<2x512xf32> -> vector<2x512xf32>
    %88 = arith.addf %85, %87 : vector<2x512xf32>
    %89 = vector.extract_strided_slice %88 {offsets = [0, 0], sizes = [2, 384], strides = [1, 1]} : vector<2x512xf32> to vector<2x384xf32>
    %90 = arith.negf %89 : vector<2x384xf32>
    %91 = math.exp %90 : vector<2x384xf32>
    %cst_36 = arith.constant 1.000000e+00 : f32
    %92 = vector.broadcast %cst_36 : f32 to vector<2x384xf32>
    %93 = arith.addf %92, %91 : vector<2x384xf32>
    %94 = arith.divf %92, %93 : vector<2x384xf32>
    %95 = vector.extract_strided_slice %94 {offsets = [0, 0], sizes = [2, 128], strides = [1, 1]} : vector<2x384xf32> to vector<2x128xf32>
    %96 = vector.extract_strided_slice %94 {offsets = [0, 128], sizes = [2, 128], strides = [1, 1]} : vector<2x384xf32> to vector<2x128xf32>
    %97 = vector.extract_strided_slice %94 {offsets = [0, 256], sizes = [2, 128], strides = [1, 1]} : vector<2x384xf32> to vector<2x128xf32>
    %98 = vector.extract_strided_slice %88 {offsets = [0, 384], sizes = [2, 128], strides = [1, 1]} : vector<2x512xf32> to vector<2x128xf32>
    %99 = math.tanh %98 : vector<2x128xf32>
    %100 = arith.mulf %96, %81 : vector<2x128xf32>
    %101 = arith.mulf %95, %99 : vector<2x128xf32>
    %102 = arith.addf %100, %101 : vector<2x128xf32>
    %103 = math.tanh %102 : vector<2x128xf32>
    %104 = arith.mulf %97, %103 : vector<2x128xf32>
    %c4 = arith.constant 4 : index
    %c0_37 = arith.constant 0 : index
    %c0_38 = arith.constant 0 : index
    %105 = vector.load %arg7[%c4, %c0_37, %c0_38] : memref<8x2x512xf32, #tpu.memory_space<vmem>>, vector<1x2x512xf32>
    %106 = vector.shape_cast %105 : vector<1x2x512xf32> to vector<2x512xf32>
    %c0_39 = arith.constant 0 : index
    %c0_40 = arith.constant 0 : index
    %107 = vector.load %arg2[%c0_39, %c0_40] : memref<128x512xf32, #tpu.memory_space<vmem>>, vector<128x512xf32>
    %cst_41 = arith.constant dense<0.000000e+00> : vector<2x512xf32>
    %108 = tpu.matmul %104, %107, %cst_41 {dimension_numbers = #tpu.dot_dimension_numbers<[1], [0], [0], [1], [0, 0, 1, 1], [], []>} : vector<2x128xf32>, vector<128x512xf32>, vector<2x512xf32> -> vector<2x512xf32>
    %109 = arith.addf %106, %108 : vector<2x512xf32>
    %110 = vector.extract_strided_slice %109 {offsets = [0, 0], sizes = [2, 384], strides = [1, 1]} : vector<2x512xf32> to vector<2x384xf32>
    %111 = arith.negf %110 : vector<2x384xf32>
    %112 = math.exp %111 : vector<2x384xf32>
    %cst_42 = arith.constant 1.000000e+00 : f32
    %113 = vector.broadcast %cst_42 : f32 to vector<2x384xf32>
    %114 = arith.addf %113, %112 : vector<2x384xf32>
    %115 = arith.divf %113, %114 : vector<2x384xf32>
    %116 = vector.extract_strided_slice %115 {offsets = [0, 0], sizes = [2, 128], strides = [1, 1]} : vector<2x384xf32> to vector<2x128xf32>
    %117 = vector.extract_strided_slice %115 {offsets = [0, 128], sizes = [2, 128], strides = [1, 1]} : vector<2x384xf32> to vector<2x128xf32>
    %118 = vector.extract_strided_slice %115 {offsets = [0, 256], sizes = [2, 128], strides = [1, 1]} : vector<2x384xf32> to vector<2x128xf32>
    %119 = vector.extract_strided_slice %109 {offsets = [0, 384], sizes = [2, 128], strides = [1, 1]} : vector<2x512xf32> to vector<2x128xf32>
    %120 = math.tanh %119 : vector<2x128xf32>
    %121 = arith.mulf %117, %102 : vector<2x128xf32>
    %122 = arith.mulf %116, %120 : vector<2x128xf32>
    %123 = arith.addf %121, %122 : vector<2x128xf32>
    %124 = math.tanh %123 : vector<2x128xf32>
    %125 = arith.mulf %118, %124 : vector<2x128xf32>
    %c5 = arith.constant 5 : index
    %c0_43 = arith.constant 0 : index
    %c0_44 = arith.constant 0 : index
    %126 = vector.load %arg7[%c5, %c0_43, %c0_44] : memref<8x2x512xf32, #tpu.memory_space<vmem>>, vector<1x2x512xf32>
    %127 = vector.shape_cast %126 : vector<1x2x512xf32> to vector<2x512xf32>
    %c0_45 = arith.constant 0 : index
    %c0_46 = arith.constant 0 : index
    %128 = vector.load %arg2[%c0_45, %c0_46] : memref<128x512xf32, #tpu.memory_space<vmem>>, vector<128x512xf32>
    %cst_47 = arith.constant dense<0.000000e+00> : vector<2x512xf32>
    %129 = tpu.matmul %125, %128, %cst_47 {dimension_numbers = #tpu.dot_dimension_numbers<[1], [0], [0], [1], [0, 0, 1, 1], [], []>} : vector<2x128xf32>, vector<128x512xf32>, vector<2x512xf32> -> vector<2x512xf32>
    %130 = arith.addf %127, %129 : vector<2x512xf32>
    %131 = vector.extract_strided_slice %130 {offsets = [0, 0], sizes = [2, 384], strides = [1, 1]} : vector<2x512xf32> to vector<2x384xf32>
    %132 = arith.negf %131 : vector<2x384xf32>
    %133 = math.exp %132 : vector<2x384xf32>
    %cst_48 = arith.constant 1.000000e+00 : f32
    %134 = vector.broadcast %cst_48 : f32 to vector<2x384xf32>
    %135 = arith.addf %134, %133 : vector<2x384xf32>
    %136 = arith.divf %134, %135 : vector<2x384xf32>
    %137 = vector.extract_strided_slice %136 {offsets = [0, 0], sizes = [2, 128], strides = [1, 1]} : vector<2x384xf32> to vector<2x128xf32>
    %138 = vector.extract_strided_slice %136 {offsets = [0, 128], sizes = [2, 128], strides = [1, 1]} : vector<2x384xf32> to vector<2x128xf32>
    %139 = vector.extract_strided_slice %136 {offsets = [0, 256], sizes = [2, 128], strides = [1, 1]} : vector<2x384xf32> to vector<2x128xf32>
    %140 = vector.extract_strided_slice %130 {offsets = [0, 384], sizes = [2, 128], strides = [1, 1]} : vector<2x512xf32> to vector<2x128xf32>
    %141 = math.tanh %140 : vector<2x128xf32>
    %142 = arith.mulf %138, %123 : vector<2x128xf32>
    %143 = arith.mulf %137, %141 : vector<2x128xf32>
    %144 = arith.addf %142, %143 : vector<2x128xf32>
    %145 = math.tanh %144 : vector<2x128xf32>
    %146 = arith.mulf %139, %145 : vector<2x128xf32>
    %c6 = arith.constant 6 : index
    %c0_49 = arith.constant 0 : index
    %c0_50 = arith.constant 0 : index
    %147 = vector.load %arg7[%c6, %c0_49, %c0_50] : memref<8x2x512xf32, #tpu.memory_space<vmem>>, vector<1x2x512xf32>
    %148 = vector.shape_cast %147 : vector<1x2x512xf32> to vector<2x512xf32>
    %c0_51 = arith.constant 0 : index
    %c0_52 = arith.constant 0 : index
    %149 = vector.load %arg2[%c0_51, %c0_52] : memref<128x512xf32, #tpu.memory_space<vmem>>, vector<128x512xf32>
    %cst_53 = arith.constant dense<0.000000e+00> : vector<2x512xf32>
    %150 = tpu.matmul %146, %149, %cst_53 {dimension_numbers = #tpu.dot_dimension_numbers<[1], [0], [0], [1], [0, 0, 1, 1], [], []>} : vector<2x128xf32>, vector<128x512xf32>, vector<2x512xf32> -> vector<2x512xf32>
    %151 = arith.addf %148, %150 : vector<2x512xf32>
    %152 = vector.extract_strided_slice %151 {offsets = [0, 0], sizes = [2, 384], strides = [1, 1]} : vector<2x512xf32> to vector<2x384xf32>
    %153 = arith.negf %152 : vector<2x384xf32>
    %154 = math.exp %153 : vector<2x384xf32>
    %cst_54 = arith.constant 1.000000e+00 : f32
    %155 = vector.broadcast %cst_54 : f32 to vector<2x384xf32>
    %156 = arith.addf %155, %154 : vector<2x384xf32>
    %157 = arith.divf %155, %156 : vector<2x384xf32>
    %158 = vector.extract_strided_slice %157 {offsets = [0, 0], sizes = [2, 128], strides = [1, 1]} : vector<2x384xf32> to vector<2x128xf32>
    %159 = vector.extract_strided_slice %157 {offsets = [0, 128], sizes = [2, 128], strides = [1, 1]} : vector<2x384xf32> to vector<2x128xf32>
    %160 = vector.extract_strided_slice %157 {offsets = [0, 256], sizes = [2, 128], strides = [1, 1]} : vector<2x384xf32> to vector<2x128xf32>
    %161 = vector.extract_strided_slice %151 {offsets = [0, 384], sizes = [2, 128], strides = [1, 1]} : vector<2x512xf32> to vector<2x128xf32>
    %162 = math.tanh %161 : vector<2x128xf32>
    %163 = arith.mulf %159, %144 : vector<2x128xf32>
    %164 = arith.mulf %158, %162 : vector<2x128xf32>
    %165 = arith.addf %163, %164 : vector<2x128xf32>
    %166 = math.tanh %165 : vector<2x128xf32>
    %167 = arith.mulf %160, %166 : vector<2x128xf32>
    %c7 = arith.constant 7 : index
    %c0_55 = arith.constant 0 : index
    %c0_56 = arith.constant 0 : index
    %168 = vector.load %arg7[%c7, %c0_55, %c0_56] : memref<8x2x512xf32, #tpu.memory_space<vmem>>, vector<1x2x512xf32>
    %169 = vector.shape_cast %168 : vector<1x2x512xf32> to vector<2x512xf32>
    %c0_57 = arith.constant 0 : index
    %c0_58 = arith.constant 0 : index
    %170 = vector.load %arg2[%c0_57, %c0_58] : memref<128x512xf32, #tpu.memory_space<vmem>>, vector<128x512xf32>
    %cst_59 = arith.constant dense<0.000000e+00> : vector<2x512xf32>
    %171 = tpu.matmul %167, %170, %cst_59 {dimension_numbers = #tpu.dot_dimension_numbers<[1], [0], [0], [1], [0, 0, 1, 1], [], []>} : vector<2x128xf32>, vector<128x512xf32>, vector<2x512xf32> -> vector<2x512xf32>
    %172 = arith.addf %169, %171 : vector<2x512xf32>
    %173 = vector.extract_strided_slice %172 {offsets = [0, 0], sizes = [2, 384], strides = [1, 1]} : vector<2x512xf32> to vector<2x384xf32>
    %174 = arith.negf %173 : vector<2x384xf32>
    %175 = math.exp %174 : vector<2x384xf32>
    %cst_60 = arith.constant 1.000000e+00 : f32
    %176 = vector.broadcast %cst_60 : f32 to vector<2x384xf32>
    %177 = arith.addf %176, %175 : vector<2x384xf32>
    %178 = arith.divf %176, %177 : vector<2x384xf32>
    %179 = vector.extract_strided_slice %178 {offsets = [0, 0], sizes = [2, 128], strides = [1, 1]} : vector<2x384xf32> to vector<2x128xf32>
    %180 = vector.extract_strided_slice %178 {offsets = [0, 128], sizes = [2, 128], strides = [1, 1]} : vector<2x384xf32> to vector<2x128xf32>
    %181 = vector.extract_strided_slice %178 {offsets = [0, 256], sizes = [2, 128], strides = [1, 1]} : vector<2x384xf32> to vector<2x128xf32>
    %182 = vector.extract_strided_slice %172 {offsets = [0, 384], sizes = [2, 128], strides = [1, 1]} : vector<2x512xf32> to vector<2x128xf32>
    %183 = math.tanh %182 : vector<2x128xf32>
    %184 = arith.mulf %180, %165 : vector<2x128xf32>
    %185 = arith.mulf %179, %183 : vector<2x128xf32>
    %186 = arith.addf %184, %185 : vector<2x128xf32>
    %187 = math.tanh %186 : vector<2x128xf32>
    %188 = arith.mulf %181, %187 : vector<2x128xf32>
    %c0_61 = arith.constant 0 : index
    %c0_62 = arith.constant 0 : index
    %189 = vector.load %arg4[%c0_61, %c0_62] : memref<128x10xf32, #tpu.memory_space<vmem>>, vector<128x10xf32>
    %cst_63 = arith.constant dense<0.000000e+00> : vector<2x10xf32>
    %190 = tpu.matmul %188, %189, %cst_63 {dimension_numbers = #tpu.dot_dimension_numbers<[1], [0], [0], [1], [0, 0, 1, 1], [], []>} : vector<2x128xf32>, vector<128x10xf32>, vector<2x10xf32> -> vector<2x10xf32>
    %c0_64 = arith.constant 0 : index
    %c0_65 = arith.constant 0 : index
    %191 = vector.load %arg5[%c0_64, %c0_65] : memref<1x10xf32, #tpu.memory_space<vmem>>, vector<1x10xf32>
    %192 = vector.broadcast %191 : vector<1x10xf32> to vector<2x10xf32>
    %193 = arith.addf %190, %192 : vector<2x10xf32>
    %c0_66 = arith.constant 0 : index
    %c0_67 = arith.constant 0 : index
    %194 = vector.load %arg6[%c0_66, %c0_67] : memref<2x10xf32, #tpu.memory_space<vmem>>, vector<2x10xf32>
    tpu.vector_store %arg6[%c0_66, %c0_67], %193 {strides = array<i32>} : memref<2x10xf32, #tpu.memory_space<vmem>>, vector<2x10xf32>,
    return
  }
}

</mosaic_0001>

<bundles_post_ra>
// kernel: tpu_custom_call.1
= control target key start
LH: loop header
LB: loop body
LE: loop exit
PB: predicated region body
PF: predicated region fallthrough
CT: control target
= control target key end

     0   :  { %11 = vsyncpa [#allocation4], 0  ;;  %s3665_s0 = inlined_call_operand.vmem [shape: f32[8,2,2], index: 0, kind: input, shape index: {}]   ;;  %s3666_s1 = inlined_call_operand.vmem [shape: f32[2,512], index: 1, kind: input, shape index: {}]   ;;  %s3667_s2 = inlined_call_operand.hbm [shape: f32[128,512], index: 2, kind: input, shape index: {}]   ;;  %s3668_s3 = inlined_call_operand.vmem [shape: f32[1,512], index: 3, kind: input, shape index: {}]   ;;  %s3669_s4 = inlined_call_operand.vmem [shape: f32[128,10], index: 4, kind: input, shape index: {}]   ;;  %s3670_s5 = inlined_call_operand.vmem [shape: f32[1,10], index: 5, kind: input, shape index: {}]   ;;  %s3671_s6 = inlined_call_operand.hbm [shape: f32[2,10], index: 6, kind: output, shape index: {}]  }
   0x1   :  { %12 = vsyncpa [#allocation5], 0  ;;  %s2414_s21 = smov [#allocation3]  }
   0x2   :  { %s22_s22 = sshll.u32 %s2414_s21, 4  ;;  %s23_s22 = int_to_ptr.vmem [resolvable:$true] %s22_s22 }
   0x3   :  { %s2378_s23 = scalar_lea.vmem %s23_s22, 8192  ;;  %p2383_p1 = scmp.lt.s32.totalorder %s23_s22, %s23_s22 }
   0x4   :  { %p2379_p0 = scmp.ne.s32.totalorder %s23_s22, %s2378_s23  ;;  %p2384_p2 = scmp.lt.s32.totalorder %s2378_s23, %s2378_s23 }
   0x6   :  { %p2385_p3 = por %p2384_p2, %p2383_p1 }
   0x8   :  { %p2386_p4 = pnand %p2385_p3, %p2379_p0 }
   0xa   :  { %2389 = shalt.err (!%p2386_p4)
}
   0xb   :  { %s2415_s24 = smov 512   ;;  %s2416_s25 = smov 32  }
   0xc   :  { %28 = dma.hbm_to_vmem [thread:$0]  %s3667_s2, 8192, %s23_s22, [#allocation4], %s2415_s24, %s2415_s24, %s2416_s25  }
   0xd   :  { %2410 = dma.done.wait [#allocation4], 8192  }
   0xe   :  { %2411 = vsyncadd [#allocation4], 4294959104  ;;  %v3673_v0 = vmov 0.0   ;;  %v3672_v1 = vmov 0   ;;  %v2465_v2 = vld [vmem:[#allocation3 + $0x1e8] sm:$0xff]  ;;  %v2467_v3 = vld [vmem:[#allocation3 + $0x1f8] sm:$0xff] }
   0xf   :  { %626 = vmatprep.mubr.f32.mxu0 %v3673_v0  ;;  %697 = vmatprep.mubr.f32.mxu1 %v3673_v0  ;;  %3809 = vst [vmem:[#allocation9_spill] sm:$0xff] %v2467_v3  ;;  %v2469_v4 = vld [vmem:[#allocation3 + $0x1e0] sm:$0xff]  ;;  %v2473_v5 = vld [vmem:[#allocation3 + $0x1f0] sm:$0xff]  ;;  %v2475_v6 = vld [vmem:[#allocation3 + $0x1c8] sm:$0xff]  ;;  %vm2421_vm0 = vmmov 0   ;;  %s2422_s27 = smov [#allocation6]  }
  0x10   :  { %2239 = vset.pattern.permute.xlu1 %v3672_v1  ;;  %2237 = vset.pattern.permute.xlu0 %v3672_v1  ;;  %v2477_v7 = vld [vmem:[#allocation3 + $0x1d8] sm:$0xff]  ;;  %v2481_v8 = vld [vmem:[#allocation3 + $0x1c0] sm:$0xff]  ;;  %v2483_v9 = vld [vmem:[#allocation3 + $0x1d0] sm:$0xff]  ;;  %s2157_s2 = sshll.u32 %s2422_s27, 4  ;;  %vm2149_vm1 = vcmask 74752   ;;  %s2158_s2 = int_to_ptr.vmem [resolvable:$true] %s2157_s2 }
  0x11   :  { %562 = vmatprep.subr.mxu0 %v2465_v2  ;;  %633 = vmatprep.subr.mxu1 %v2467_v3  ;;  %3810 = vst [vmem:[#allocation10_spill] sm:$0xff] %v2477_v7  ;;  %v2485_v10 = vld [vmem:[#allocation3 + $0x1a8] sm:$0xff]  ;;  %v2489_v11 = vld [vmem:[#allocation3 + $0x1b8] sm:$0xff]  ;;  %v2491_v12 = vld [vmem:[#allocation3 + $0x1a0] sm:$0xff]  ;;  %s2390_s28 = scalar_lea.vmem %s2158_s2, 32  ;;  %p2395_p6 = scmp.lt.s32.totalorder %s2158_s2, %s2158_s2 }
  0x12   :  { %563 = vmatpush1.msra.mxu0 %v2469_v4  ;;  %634 = vmatpush1.msra.mxu1 %v2473_v5  ;;  %v2493_v13 = vld [vmem:[#allocation3 + $0x1b0] sm:$0xff]  ;;  %v2497_v14 = vld [vmem:[#allocation3 + $0x188] sm:$0xff]  ;;  %v2499_v15 = vld [vmem:[#allocation3 + $0x198] sm:$0xff]  ;;  %p2391_p5 = scmp.ne.s32.totalorder %s2158_s2, %s2390_s28  ;;  %p2396_p7 = scmp.lt.s32.totalorder %s2390_s28, %s2390_s28 }
  0x13   :  { %564 = vmatprep.subr.mxu0 %v2475_v6  ;;  %635 = vmatprep.subr.mxu1 %v2477_v7  ;;  %v2503_v16 = vld [vmem:[#allocation3 + $0x180] sm:$0xff]  ;;  %v2505_v17 = vld [vmem:[#allocation3 + $0x190] sm:$0xff]  ;;  %v2509_v18 = vld [vmem:[#allocation3 + $0x168] sm:$0xff] }
  0x14   :  { %565 = vmatpush1.msra.mxu0 %v2481_v8  ;;  %636 = vmatpush1.msra.mxu1 %v2483_v9  ;;  %v2511_v19 = vld [vmem:[#allocation3 + $0x178] sm:$0xff]  ;;  %v2515_v20 = vld [vmem:[#allocation3 + $0x160] sm:$0xff]  ;;  %v2517_v21 = vld [vmem:[#allocation3 + $0x170] sm:$0xff]  ;;  %p2397_p8 = por %p2396_p7, %p2395_p6 }
  0x15   :  { %566 = vmatprep.subr.mxu0 %v2485_v10  ;;  %637 = vmatprep.subr.mxu1 %v2489_v11  ;;  %3811 = vst [vmem:[#allocation11_spill] sm:$0xff] %v2511_v19  ;;  %3812 = vst [vmem:[#allocation12_spill] sm:$0xff] %v2515_v20  ;;  %v2521_v22 = vld [vmem:[#allocation3 + $0x148] sm:$0xff]  ;;  %v2523_v23 = vld [vmem:[#allocation3 + $0x158] sm:$0xff] }
  0x16   :  { %567 = vmatpush1.msra.mxu0 %v2491_v12  ;;  %638 = vmatpush1.msra.mxu1 %v2493_v13  ;;  %3813 = vst [vmem:[#allocation13_spill] sm:$0xff] %v2517_v21  ;;  %3814 = vst [vmem:[#allocation14_spill] sm:$0xff] %v2521_v22  ;;  %v2527_v24 = vld [vmem:[#allocation3 + $0x140] sm:$0xff]  ;;  %v2529_v25 = vld [vmem:[#allocation3 + $0x150] sm:$0xff]  ;;  %p2398_p9 = pnand %p2397_p8, %p2391_p5 }
  0x17   :  { %568 = vmatprep.subr.mxu0 %v2497_v14  ;;  %639 = vmatprep.subr.mxu1 %v2499_v15  ;;  %3815 = vst [vmem:[#allocation15_spill] sm:$0xff] %v2523_v23  ;;  %3816 = vst [vmem:[#allocation16_spill] sm:$0xff] %v2527_v24  ;;  %v2533_v26 = vld [vmem:[#allocation3 + $0x128] sm:$0xff]  ;;  %v2535_v27 = vld [vmem:[#allocation3 + $0x138] sm:$0xff] }
  0x18   :  { %569 = vmatpush1.msra.mxu0 %v2503_v16  ;;  %640 = vmatpush1.msra.mxu1 %v2505_v17  ;;  %3817 = vst [vmem:[#allocation17_spill] sm:$0xff] %v2529_v25  ;;  %3818 = vst [vmem:[#allocation18_spill] sm:$0xff] %v2533_v26  ;;  %v2539_v28 = vld [vmem:[#allocation3 + $0x120] sm:$0xff]  ;;  %v2541_v29 = vld [vmem:[#allocation3 + $0x130] sm:$0xff] }
  0x19   :  { %570 = vmatprep.subr.mxu0 %v2509_v18  ;;  %641 = vmatprep.subr.mxu1 %v2511_v19  ;;  %3819 = vst [vmem:[#allocation19_spill] sm:$0xff] %v2535_v27  ;;  %3820 = vst [vmem:[#allocation20_spill] sm:$0xff] %v2539_v28  ;;  %v2545_v30 = vld [vmem:[#allocation3 + $0x108] sm:$0xff]  ;;  %v2547_v31 = vld [vmem:[#allocation3 + $0x118] sm:$0xff] }
  0x1a   :  { %571 = vmatpush1.msra.mxu0 %v2515_v20  ;;  %642 = vmatpush1.msra.mxu1 %v2517_v21  ;;  %3821 = vst [vmem:[#allocation21_spill] sm:$0xff] %v2541_v29  ;;  %3822 = vst [vmem:[#allocation22_spill] sm:$0xff] %v2545_v30  ;;  %v2551_v32 = vld [vmem:[#allocation3 + $0x100] sm:$0xff]  ;;  %v2553_v33 = vld [vmem:[#allocation3 + $0x110] sm:$0xff] }
  0x1b   :  { %572 = vmatprep.subr.mxu0 %v2521_v22  ;;  %643 = vmatprep.subr.mxu1 %v2523_v23  ;;  %3823 = vst [vmem:[#allocation23_spill] sm:$0xff] %v2547_v31  ;;  %3824 = vst [vmem:[#allocation24_spill] sm:$0xff] %v2551_v32  ;;  %v2557_v34 = vld [vmem:[#allocation3 + $0xe8] sm:$0xff]  ;;  %v2559_v35 = vld [vmem:[#allocation3 + $0xf8] sm:$0xff] }
  0x1c   :  { %573 = vmatpush1.msra.mxu0 %v2527_v24  ;;  %644 = vmatpush1.msra.mxu1 %v2529_v25  ;;  %3825 = vst [vmem:[#allocation25_spill] sm:$0xff] %v2553_v33  ;;  %3826 = vst [vmem:[#allocation26_spill] sm:$0xff] %v2557_v34  ;;  %v2563_v36 = vld [vmem:[#allocation3 + $0xe0] sm:$0xff]  ;;  %v2565_v37 = vld [vmem:[#allocation3 + $0xf0] sm:$0xff] }
  0x1d   :  { %574 = vmatprep.subr.mxu0 %v2533_v26  ;;  %645 = vmatprep.subr.mxu1 %v2535_v27  ;;  %3827 = vst [vmem:[#allocation27_spill] sm:$0xff] %v2559_v35  ;;  %3828 = vst [vmem:[#allocation28_spill] sm:$0xff] %v2563_v36  ;;  %v2569_v38 = vld [vmem:[#allocation3 + $0xc8] sm:$0xff]  ;;  %v2571_v39 = vld [vmem:[#allocation3 + $0xd8] sm:$0xff] }
  0x1e   :  { %575 = vmatpush1.msra.mxu0 %v2539_v28  ;;  %646 = vmatpush1.msra.mxu1 %v2541_v29  ;;  %3829 = vst [vmem:[#allocation29_spill] sm:$0xff] %v2565_v37  ;;  %3830 = vst [vmem:[#allocation30_spill] sm:$0xff] %v2569_v38  ;;  %v2575_v40 = vld [vmem:[#allocation3 + $0xc0] sm:$0xff]  ;;  %v2577_v41 = vld [vmem:[#allocation3 + $0xd0] sm:$0xff] }
  0x1f   :  { %576 = vmatprep.subr.mxu0 %v2545_v30  ;;  %647 = vmatprep.subr.mxu1 %v2547_v31  ;;  %3831 = vst [vmem:[#allocation31_spill] sm:$0xff] %v2571_v39  ;;  %3832 = vst [vmem:[#allocation32_spill] sm:$0xff] %v2575_v40  ;;  %v2581_v42 = vld [vmem:[#allocation3 + $0xa8] sm:$0xff]  ;;  %v2583_v43 = vld [vmem:[#allocation3 + $0xb8] sm:$0xff] }
  0x20   :  { %577 = vmatpush1.msra.mxu0 %v2551_v32  ;;  %648 = vmatpush1.msra.mxu1 %v2553_v33  ;;  %3833 = vst [vmem:[#allocation33_spill] sm:$0xff] %v2577_v41  ;;  %3834 = vst [vmem:[#allocation34_spill] sm:$0xff] %v2581_v42  ;;  %v2587_v44 = vld [vmem:[#allocation3 + $0xa0] sm:$0xff]  ;;  %v2589_v45 = vld [vmem:[#allocation3 + $0xb0] sm:$0xff] }
  0x21   :  { %578 = vmatprep.subr.mxu0 %v2557_v34  ;;  %649 = vmatprep.subr.mxu1 %v2559_v35  ;;  %3835 = vst [vmem:[#allocation35_spill] sm:$0xff] %v2583_v43  ;;  %3836 = vst [vmem:[#allocation36_spill] sm:$0xff] %v2587_v44  ;;  %v2593_v46 = vld [vmem:[#allocation3 + $0x88] sm:$0xff]  ;;  %v2595_v47 = vld [vmem:[#allocation3 + $0x98] sm:$0xff] }
  0x22   :  { %579 = vmatpush1.msra.mxu0 %v2563_v36  ;;  %650 = vmatpush1.msra.mxu1 %v2565_v37  ;;  %3837 = vst [vmem:[#allocation37_spill] sm:$0xff] %v2589_v45  ;;  %3838 = vst [vmem:[#allocation38_spill] sm:$0xff] %v2593_v46  ;;  %v2599_v48 = vld [vmem:[#allocation3 + $0x80] sm:$0xff]  ;;  %v2601_v49 = vld [vmem:[#allocation3 + $0x90] sm:$0xff] }
  0x23   :  { %580 = vmatprep.subr.mxu0 %v2569_v38  ;;  %651 = vmatprep.subr.mxu1 %v2571_v39  ;;  %3839 = vst [vmem:[#allocation39_spill] sm:$0xff] %v2595_v47  ;;  %3840 = vst [vmem:[#allocation40_spill] sm:$0xff] %v2599_v48  ;;  %v2605_v50 = vld [vmem:[#allocation3 + $0x68] sm:$0xff]  ;;  %v2607_v51 = vld [vmem:[#allocation3 + $0x78] sm:$0xff] }
  0x24   :  { %581 = vmatpush1.msra.mxu0 %v2575_v40  ;;  %652 = vmatpush1.msra.mxu1 %v2577_v41  ;;  %3841 = vst [vmem:[#allocation41_spill] sm:$0xff] %v2601_v49  ;;  %3842 = vst [vmem:[#allocation42_spill] sm:$0xff] %v2605_v50  ;;  %v2611_v52 = vld [vmem:[#allocation3 + $0x60] sm:$0xff]  ;;  %v2613_v53 = vld [vmem:[#allocation3 + $0x70] sm:$0xff] }
  0x25   :  { %582 = vmatprep.subr.mxu0 %v2581_v42  ;;  %653 = vmatprep.subr.mxu1 %v2583_v43  ;;  %3843 = vst [vmem:[#allocation43_spill] sm:$0xff] %v2607_v51  ;;  %3844 = vst [vmem:[#allocation44_spill] sm:$0xff] %v2611_v52  ;;  %v2617_v54 = vld [vmem:[#allocation3 + $0x48] sm:$0xff]  ;;  %v2619_v55 = vld [vmem:[#allocation3 + $0x58] sm:$0xff] }
  0x26   :  { %583 = vmatpush1.msra.mxu0 %v2587_v44  ;;  %654 = vmatpush1.msra.mxu1 %v2589_v45  ;;  %3845 = vst [vmem:[#allocation45_spill] sm:$0xff] %v2613_v53  ;;  %3846 = vst [vmem:[#allocation46_spill] sm:$0xff] %v2617_v54  ;;  %v2623_v56 = vld [vmem:[#allocation3 + $0x40] sm:$0xff]  ;;  %v2625_v57 = vld [vmem:[#allocation3 + $0x50] sm:$0xff] }
  0x27   :  { %584 = vmatprep.subr.mxu0 %v2593_v46  ;;  %655 = vmatprep.subr.mxu1 %v2595_v47  ;;  %3847 = vst [vmem:[#allocation47_spill] sm:$0xff] %v2619_v55  ;;  %3848 = vst [vmem:[#allocation48_spill] sm:$0xff] %v2623_v56  ;;  %v2629_v58 = vld [vmem:[#allocation3 + $0x28] sm:$0xff]  ;;  %v2631_v59 = vld [vmem:[#allocation3 + $0x38] sm:$0xff] }
  0x28   :  { %585 = vmatpush1.msra.mxu0 %v2599_v48  ;;  %656 = vmatpush1.msra.mxu1 %v2601_v49  ;;  %3849 = vst [vmem:[#allocation49_spill] sm:$0xff] %v2625_v57  ;;  %3850 = vst [vmem:[#allocation50_spill] sm:$0xff] %v2629_v58  ;;  %v2635_v60 = vld [vmem:[#allocation3 + $0x20] sm:$0xff]  ;;  %v2637_v61 = vld [vmem:[#allocation3 + $0x30] sm:$0xff] }
  0x29   :  { %586 = vmatprep.subr.mxu0 %v2605_v50  ;;  %657 = vmatprep.subr.mxu1 %v2607_v51  ;;  %3851 = vst [vmem:[#allocation51_spill] sm:$0xff] %v2631_v59  ;;  %3852 = vst [vmem:[#allocation52_spill] sm:$0xff] %v2635_v60  ;;  %v2641_v62 = vld [vmem:[#allocation3 + $0x8] sm:$0xff]  ;;  %v2643_v63 = vld [vmem:[#allocation3 + $0x18] sm:$0xff] }
  0x2a   :  { %587 = vmatpush1.msra.mxu0 %v2611_v52  ;;  %658 = vmatpush1.msra.mxu1 %v2613_v53  ;;  %3853 = vst [vmem:[#allocation53_spill] sm:$0xff] %v2637_v61  ;;  %3854 = vst [vmem:[#allocation54_spill] sm:$0xff] %v2641_v62  ;;  %v2647_v1 = vld [vmem:[#allocation3] sm:$0xff]  ;;  %v2649_v0 = vld [vmem:[#allocation3 + $0x10] sm:$0xff] }
  0x2b   :  { %588 = vmatprep.subr.mxu0 %v2617_v54  ;;  %659 = vmatprep.subr.mxu1 %v2619_v55  ;;  %3855 = vst [vmem:[#allocation55_spill] sm:$0xff] %v2643_v63  ;;  %3856 = vst [vmem:[#allocation56_spill] sm:$0xff] %v2647_v1 }
  0x2c   :  { %589 = vmatpush1.msra.mxu0 %v2623_v56  ;;  %660 = vmatpush1.msra.mxu1 %v2625_v57  ;;  %3857 = vst [vmem:[#allocation57_spill] sm:$0xff] %v2649_v0  ;;  %v39_v57 = vld [vmem:[%s3665_s0 + $0x2] sm:$0x3] }
  0x2d   :  { %590 = vmatprep.subr.mxu0 %v2629_v58  ;;  %661 = vmatprep.subr.mxu1 %v2631_v59  ;;  %v38_v59 = vld [vmem:[%s3665_s0] sm:$0x3]  ;;  %v3858_v58 = vmov 0.0  }
  0x2e   :  { %591 = vmatpush1.msra.mxu0 %v2635_v60  ;;  %662 = vmatpush1.msra.mxu1 %v2637_v61 }
  0x2f   :  { %592 = vmatprep.subr.mxu0 %v2641_v62  ;;  %663 = vmatprep.subr.mxu1 %v2643_v63 }
  0x30   :  { %593 = vmatpush1.msra.mxu0 %v2647_v1  ;;  %664 = vmatpush1.msra.mxu1 %v2649_v0  ;;  %v2419_v1 = vmov 1  }
  0x31   :  { %627 = vmatmul.mubr.f32.vlgmr.msra.gmra.mxu0 %v3858_v58  ;;  %698 = vmatmul.mubr.f32.vlgmr.msra.gmra.mxu1 %v3858_v58 }
  0x32   :  { %54 = vperm.xlu1 %2239, %v39_v57   ;;  %49 = vperm.xlu0 %2237, %v38_v59  }
  0x33   :  { %749 = vmatprep.subr.mxu0 %v2465_v2  ;;  %820 = vmatprep.subr.mxu1 %v2467_v3  ;;  %v40_v3 = vld [vmem:[%s3665_s0 + $0x4] sm:$0x3] }
  0x34   :  { %750 = vmatpush1.msra.mxu0 %v2469_v4  ;;  %821 = vmatpush1.msra.mxu1 %v2473_v5 }
  0x35   :  { %751 = vmatprep.subr.mxu0 %v2475_v6  ;;  %822 = vmatprep.subr.mxu1 %v2477_v7  ;;  %v3859_v7 = vmov 0  }
  0x36   :  { %2240 = vset.pattern.permute.xlu1 %v2419_v1  ;;  %2238 = vset.pattern.permute.xlu0 %v2419_v1  ;;  %v41_v1 = vld [vmem:[%s3665_s0 + $0x6] sm:$0x3] }
  0x37   :  { %201 = vperm.xlu1 %2240, %v39_v57   ;;  %197 = vperm.xlu0 %2238, %v38_v59   ;;  %v44_v57 = vld [vmem:[%s3665_s0 + $0xc] sm:$0x3]  ;;  %v45_v59 = vld [vmem:[%s3665_s0 + $0xe] sm:$0x3] }
  0x38   :  { %752 = vmatpush1.msra.mxu0 %v2481_v8  ;;  %823 = vmatpush1.msra.mxu1 %v2483_v9 }
  0x39   :  { %753 = vmatprep.subr.mxu0 %v2485_v10  ;;  %824 = vmatprep.subr.mxu1 %v2489_v11 }
  0x3a   :  { %754 = vmatpush1.msra.mxu0 %v2491_v12  ;;  %825 = vmatpush1.msra.mxu1 %v2493_v13 }
  0x3b   :  { %2241 = vset.pattern.permute.xlu1 %v3859_v7  ;;  %205 = vperm.xlu0 %2238, %v40_v3   ;;  %v43_v7 = vld [vmem:[%s3665_s0 + $0xa] sm:$0x3] }
  0x3c   :  { %59 = vperm.xlu1 %2241, %v40_v3   ;;  %755 = vmatprep.subr.mxu0 %v2497_v14  ;;  %v42_v3 = vld [vmem:[%s3665_s0 + $0x8] sm:$0x3] }
  0x3d   :  { %826 = vmatprep.subr.mxu1 %v2499_v15  ;;  %756 = vmatpush1.msra.mxu0 %v2503_v16 }
  0x3e   :  { %827 = vmatpush1.msra.mxu1 %v2505_v17  ;;  %757 = vmatprep.subr.mxu0 %v2509_v18 }
  0x3f   :  { %209 = vperm.xlu0 %2238, %v41_v1   ;;  %828 = vmatprep.subr.mxu1 %v2511_v19 }
  0x40   :  { %64 = vperm.xlu1 %2241, %v41_v1   ;;  %758 = vmatpush1.msra.mxu0 %v2515_v20  ;;  %v3860_v1 = vld [vmem:[#allocation49_spill] sm:$0xff] }
  0x41   :  { %829 = vmatpush1.msra.mxu1 %v2517_v21  ;;  %759 = vmatprep.subr.mxu0 %v2521_v22 }
  0x42   :  { %830 = vmatprep.subr.mxu1 %v2523_v23  ;;  %760 = vmatpush1.msra.mxu0 %v2527_v24 }
  0x43   :  { %213 = vperm.xlu0 %2238, %v42_v3   ;;  %831 = vmatpush1.msra.mxu1 %v2529_v25 }
  0x44   :  { %69 = vperm.xlu1 %2241, %v42_v3   ;;  %761 = vmatprep.subr.mxu0 %v2533_v26  ;;  %v3861_v3 = vld [vmem:[#allocation50_spill] sm:$0xff] }
  0x45   :  { %832 = vmatprep.subr.mxu1 %v2535_v27  ;;  %762 = vmatpush1.msra.mxu0 %v2539_v28 }
  0x46   :  { %833 = vmatpush1.msra.mxu1 %v2541_v29  ;;  %763 = vmatprep.subr.mxu0 %v2545_v30 }
  0x47   :  { %217 = vperm.xlu0 %2238, %v43_v7   ;;  %834 = vmatprep.subr.mxu1 %v2547_v31 }
  0x48   :  { %74 = vperm.xlu1 %2241, %v43_v7   ;;  %764 = vmatpush1.msra.mxu0 %v2551_v32  ;;  %v3862_v7 = vld [vmem:[#allocation51_spill] sm:$0xff] }
  0x49   :  { %835 = vmatpush1.msra.mxu1 %v2553_v33  ;;  %765 = vmatprep.subr.mxu0 %v2557_v34 }
  0x4a   :  { %836 = vmatprep.subr.mxu1 %v2559_v35  ;;  %766 = vmatpush1.msra.mxu0 %v2563_v36 }
  0x4b   :  { %221 = vperm.xlu0 %2238, %v44_v57   ;;  %837 = vmatpush1.msra.mxu1 %v2565_v37 }
  0x4c   :  { %79 = vperm.xlu1 %2241, %v44_v57   ;;  %767 = vmatprep.subr.mxu0 %v2569_v38  ;;  %v3863_v57 = vld [vmem:[#allocation56_spill] sm:$0xff] }
  0x4d   :  { %838 = vmatprep.subr.mxu1 %v2571_v39  ;;  %768 = vmatpush1.msra.mxu0 %v2575_v40  ;;  %v2420_v39 = vmov 1983009808  }
  0x4e   :  { %839 = vmatpush1.msra.mxu1 %v2577_v41  ;;  %769 = vmatprep.subr.mxu0 %v2581_v42  ;;  %v348_v38 = vunpack.c.l.s4 %v2420_v39 }
  0x4f   :  { %225 = vperm.xlu0 %2238, %v45_v59   ;;  %840 = vmatprep.subr.mxu1 %v2583_v43 }
  0x50   :  { %84 = vperm.xlu1 %2241, %v45_v59   ;;  %770 = vmatpush1.msra.mxu0 %v2587_v44  ;;  %v3864_v59 = vld [vmem:[#allocation9_spill] sm:$0xff]  ;;  %v349_v37 = vunpack.c.0.s8 %v348_v38 }
  0x51   :  { %841 = vmatpush1.msra.mxu1 %v2589_v45  ;;  %771 = vmatprep.subr.mxu0 %v2593_v46 }
  0x52   :  { %842 = vmatprep.subr.mxu1 %v2595_v47  ;;  %772 = vmatpush1.msra.mxu0 %v2599_v48  ;;  %v2166_v48 = vld [vmem:[%s3666_s1 + $0x1] ss:$2 sm:$0xf] }
  0x53   :  { %843 = vmatpush1.msra.mxu1 %v2601_v49  ;;  %773 = vmatprep.subr.mxu0 %v2605_v50 }
  0x54   :  { %844 = vmatprep.subr.mxu1 %v2607_v51  ;;  %774 = vmatpush1.msra.mxu0 %v2611_v52 }
  0x55   :  { %845 = vmatpush1.msra.mxu1 %v2613_v53  ;;  %775 = vmatprep.subr.mxu0 %v2617_v54 }
  0x56   :  { %846 = vmatprep.subr.mxu1 %v2619_v55  ;;  %776 = vmatpush1.msra.mxu0 %v2623_v56 }
  0x57   :  { %847 = vmatpush1.msra.mxu1 %v3860_v1  ;;  %777 = vmatprep.subr.mxu0 %v3861_v3 }
  0x58   :  { %848 = vmatprep.subr.mxu1 %v3862_v7  ;;  %778 = vmatpush1.msra.mxu0 %v2635_v60  ;;  %v88_v7 = vlaneseq }
  0x59   :  { %849 = vmatpush1.msra.mxu1 %v2637_v61  ;;  %779 = vmatprep.subr.mxu0 %v2641_v62 }
  0x5a   :  { %850 = vmatprep.subr.mxu1 %v2643_v63  ;;  %780 = vmatpush1.msra.mxu0 %v3863_v57  ;;  %v89_v60 = vshrl.u32 %v88_v7, 7  ;;  %v46_v57 = vld [vmem:[%s3666_s1] ss:$2 sm:$0xf] }
  0x5b   :  { %813 = vmatprep.mubr.f32.mxu0 %v3858_v58  ;;  %851 = vmatpush1.msra.mxu1 %v2649_v0  ;;  %v140_v0 = vld [vmem:[%s3668_s3] sm:$0xf] }
  0x5c   :  { %884 = vmatprep.mubr.f32.mxu1 %v3858_v58  ;;  %936 = vmatprep.subr.mxu0 %v2465_v2  ;;  %v90_v3 = vsub.s32 0, %v89_v60  ;;  %v94_v61 = vsub.s32 1, %v89_v60  ;;  %v98_v1 = vsub.s32 2, %v89_v60  ;;  %v102_v62 = vsub.s32 3, %v89_v60 }
  0x5d   :  { %1007 = vmatprep.subr.mxu1 %v3864_v59  ;;  %v2823_v36 = vsub.s32 %v349_v37, %v89_v60 }
  0x5e   :  { %v2758_v63 = vrot.slane %v46_v57, %v90_v3  ;;  %v2760_v58 = vrot.slane %v46_v57, %v94_v61  ;;  %v2762_v2 = vrot.slane %v46_v57, %v98_v1  ;;  %v2764_v59 = vrot.slane %v46_v57, %v102_v62 }
  0x5f   :  { %v2766_v7 = vrot.slane %v140_v0, %v90_v3  ;;  %v2768_v56 = vrot.slane %v140_v0, %v94_v61  ;;  %v2770_v55 = vrot.slane %v140_v0, %v98_v1  ;;  %v2772_v54 = vrot.slane %v140_v0, %v102_v62 }
  0x60   :  { %v2787_v44 = vrot.slane %v2166_v48, %v90_v3  ;;  %v2789_v43 = vrot.slane %v2166_v48, %v94_v61  ;;  %v2791_v42 = vrot.slane %v2166_v48, %v98_v1  ;;  %v2793_v41 = vrot.slane %v2166_v48, %v102_v62 }
  0xad   :  { %v55_v53 = vpop.permute.xlu1 %54  ;;  %v2774_v52 = vpop.permute.xlu0 %49 }
  0xae   :  { %v112_v51 = vmul.f32 %v2758_v63, %v55_v53  ;;  %v113_v50 = vmul.f32 %v2760_v58, %v55_v53  ;;  %v114_v49 = vmul.f32 %v2762_v2, %v55_v53  ;;  %v115_v57 = vmul.f32 %v2764_v59, %v55_v53 }
  0xb0   :  { %v166_v47 = vadd.f32 %v2766_v7, %v112_v51  ;;  %v167_v0 = vadd.f32 %v2768_v56, %v113_v50  ;;  %v168_v46 = vadd.f32 %v2770_v55, %v114_v49  ;;  %v169_v45 = vadd.f32 %v2772_v54, %v115_v57 }
  0xb2   :  { %v202_v53 = vpop.permute.xlu1 %201  ;;  %v2795_v40 = vpop.permute.xlu0 %197 }
  0xb3   :  { %v253_v51 = vmul.f32 %v2787_v44, %v202_v53  ;;  %v254_v50 = vmul.f32 %v2789_v43, %v202_v53  ;;  %v255_v49 = vmul.f32 %v2791_v42, %v202_v53  ;;  %v256_v3 = vmul.f32 %v2793_v41, %v202_v53 }
  0xb5   :  { %v2801_v57 = vadd.f32 %v253_v51, %v166_v47  ;;  %v2803_v61 = vadd.f32 %v254_v50, %v167_v0  ;;  %v2805_v1 = vadd.f32 %v255_v49, %v168_v46  ;;  %v2807_v48 = vadd.f32 %v256_v3, %v169_v45 }
  0xb6   :  { %v206_v62 = vpop.permute.xlu0 %205 }
  0xb7   :  { %3865 = vst [vmem:[#allocation9_spill] sm:$0xff] %v2801_v57  ;;  %3866 = vst [vmem:[#allocation58_spill] sm:$0xff] %v2803_v61  ;;  %v60_v35 = vpop.permute.xlu1 %59  ;;  %v257_v0 = vmul.f32 %v2787_v44, %v206_v62  ;;  %v258_v46 = vmul.f32 %v2789_v43, %v206_v62  ;;  %v259_v38 = vmul.f32 %v2791_v42, %v206_v62 }
  0xb8   :  { %3867 = vst [vmem:[#allocation59_spill] sm:$0xff] %v2805_v1  ;;  %3868 = vst [vmem:[#allocation60_spill] sm:$0xff] %v2807_v48  ;;  %v116_v34 = vmul.f32 %v2758_v63, %v60_v35  ;;  %v117_v47 = vmul.f32 %v2760_v58, %v60_v35  ;;  %v118_v45 = vmul.f32 %v2762_v2, %v60_v35 }
  0xb9   :  { %v119_v53 = vmul.f32 %v2764_v59, %v60_v35  ;;  %v260_v51 = vmul.f32 %v2793_v41, %v206_v62 }
  0xba   :  { %v170_v50 = vadd.f32 %v2766_v7, %v116_v34  ;;  %v171_v49 = vadd.f32 %v2768_v56, %v117_v47  ;;  %v210_v3 = vpop.permute.xlu0 %209  ;;  %v172_v39 = vadd.f32 %v2770_v55, %v118_v45 }
  0xbb   :  { %v173_v48 = vadd.f32 %v2772_v54, %v119_v53  ;;  %v65_v1 = vpop.permute.xlu1 %64  ;;  %v261_v61 = vmul.f32 %v2787_v44, %v210_v3  ;;  %v262_v35 = vmul.f32 %v2789_v43, %v210_v3 }
  0xbc   :  { %v2829_v57 = vadd.f32 %v257_v0, %v170_v50  ;;  %v2831_v33 = vadd.f32 %v258_v46, %v171_v49  ;;  %v120_v34 = vmul.f32 %v2758_v63, %v65_v1  ;;  %v121_v62 = vmul.f32 %v2760_v58, %v65_v1 }
  0xbd   :  { %v2835_v47 = vadd.f32 %v259_v38, %v172_v39  ;;  %v2837_v37 = vadd.f32 %v260_v51, %v173_v48  ;;  %v122_v60 = vmul.f32 %v2762_v2, %v65_v1  ;;  %v123_v45 = vmul.f32 %v2764_v59, %v65_v1 }
  0xbe   :  { %v174_v0 = vadd.f32 %v2766_v7, %v120_v34  ;;  %v175_v46 = vadd.f32 %v2768_v56, %v121_v62  ;;  %v263_v50 = vmul.f32 %v2791_v42, %v210_v3  ;;  %v214_v49 = vpop.permute.xlu0 %213  ;;  %v264_v51 = vmul.f32 %v2793_v41, %v210_v3 }
  0xbf   :  { %v176_v48 = vadd.f32 %v2770_v55, %v122_v60  ;;  %v177_v38 = vadd.f32 %v2772_v54, %v123_v45  ;;  %v70_v1 = vpop.permute.xlu1 %69  ;;  %v265_v45 = vmul.f32 %v2787_v44, %v214_v49  ;;  %v268_v3 = vmul.f32 %v2793_v41, %v214_v49 }
  0xc0   :  { %v2851_v32 = vadd.f32 %v261_v61, %v174_v0  ;;  %v2853_v53 = vadd.f32 %v262_v35, %v175_v46  ;;  %v124_v34 = vmul.f32 %v2758_v63, %v70_v1  ;;  %v125_v62 = vmul.f32 %v2760_v58, %v70_v1 }
  0xc1   :  { %v2857_v31 = vadd.f32 %v263_v50, %v176_v48  ;;  %v2859_v30 = vadd.f32 %v264_v51, %v177_v38  ;;  %v126_v39 = vmul.f32 %v2762_v2, %v70_v1  ;;  %v127_v60 = vmul.f32 %v2764_v59, %v70_v1 }
  0xc2   :  { %v178_v61 = vadd.f32 %v2766_v7, %v124_v34  ;;  %v179_v35 = vadd.f32 %v2768_v56, %v125_v62  ;;  %v218_v0 = vpop.permute.xlu0 %217  ;;  %v266_v38 = vmul.f32 %v2789_v43, %v214_v49  ;;  %v267_v1 = vmul.f32 %v2791_v42, %v214_v49 }
  0xc3   :  { %v180_v50 = vadd.f32 %v2770_v55, %v126_v39  ;;  %v181_v48 = vadd.f32 %v2772_v54, %v127_v60  ;;  %v75_v51 = vpop.permute.xlu1 %74  ;;  %v269_v25 = vmul.f32 %v2787_v44, %v218_v0 }
  0xc4   :  { %v2875_v34 = vadd.f32 %v265_v45, %v178_v61  ;;  %v128_v62 = vmul.f32 %v2758_v63, %v75_v51  ;;  %v2878_v29 = vadd.f32 %v266_v38, %v179_v35  ;;  %v129_v28 = vmul.f32 %v2760_v58, %v75_v51 }
  0xc5   :  { %v130_v46 = vmul.f32 %v2762_v2, %v75_v51  ;;  %v131_v39 = vmul.f32 %v2764_v59, %v75_v51  ;;  %v2883_v60 = vadd.f32 %v267_v1, %v180_v50  ;;  %v300_v27 = vadd.f32 %v268_v3, %v181_v48 }
  0xc6   :  { %v182_v26 = vadd.f32 %v2766_v7, %v128_v62  ;;  %v222_v49 = vpop.permute.xlu0 %221  ;;  %v413_v61 = vcombine.low %v2875_v34, %v2878_v29  ;;  %v183_v35 = vadd.f32 %v2768_v56, %v129_v28  ;;  %v270_v50 = vmul.f32 %v2789_v43, %v218_v0 }
  0xc7   :  { %v184_v45 = vadd.f32 %v2770_v55, %v130_v46  ;;  %v185_v38 = vadd.f32 %v2772_v54, %v131_v39  ;;  %v80_v24 = vpop.permute.xlu1 %79  ;;  %v414_v51 = vcombine.low %v2883_v60, %v300_v27  ;;  %v271_v3 = vmul.f32 %v2791_v42, %v218_v0 }
  0xc8   :  { %v272_v48 = vmul.f32 %v2793_v41, %v218_v0  ;;  %v301_v1 = vadd.f32 %v269_v25, %v182_v26  ;;  %v132_v62 = vmul.f32 %v2758_v63, %v80_v24  ;;  %v133_v29 = vmul.f32 %v2760_v58, %v80_v24 }
  0xc9   :  { %v134_v28 = vmul.f32 %v2762_v2, %v80_v24  ;;  %v302_v34 = vadd.f32 %v270_v50, %v183_v35  ;;  %v303_v46 = vadd.f32 %v271_v3, %v184_v45  ;;  %v135_v39 = vmul.f32 %v2764_v59, %v80_v24 }
  0xca   :  { %v304_v23 = vadd.f32 %v272_v48, %v185_v38  ;;  %v186_v27 = vadd.f32 %v2766_v7, %v132_v62  ;;  %v187_v60 = vadd.f32 %v2768_v56, %v133_v29  ;;  %v273_v0 = vmul.f32 %v2787_v44, %v222_v49  ;;  %v226_v35 = vpop.permute.xlu0 %225 }
  0xcb   :  { %v188_v22 = vadd.f32 %v2770_v55, %v134_v28  ;;  %v85_v25 = vpop.permute.xlu1 %84  ;;  %v430_v26 = vcombine.low %v301_v1, %v302_v34  ;;  %v189_v20 = vadd.f32 %v2772_v54, %v135_v39  ;;  %v274_v19 = vmul.f32 %v2789_v43, %v222_v49 }
  0xcc   :  { %v431_v21 = vcombine.low %v303_v46, %v304_v23  ;;  %v275_v45 = vmul.f32 %v2791_v42, %v222_v49  ;;  %v276_v24 = vmul.f32 %v2793_v41, %v222_v49  ;;  %v305_v38 = vadd.f32 %v273_v0, %v186_v27 }
  0xcd   :  { %v136_v50 = vmul.f32 %v2758_v63, %v85_v25  ;;  %v306_v3 = vadd.f32 %v274_v19, %v187_v60  ;;  %v137_v48 = vmul.f32 %v2760_v58, %v85_v25  ;;  %v138_v62 = vmul.f32 %v2762_v2, %v85_v25 }
  0xce   :  { %v139_v1 = vmul.f32 %v2764_v59, %v85_v25  ;;  %v307_v23 = vadd.f32 %v275_v45, %v188_v22  ;;  %v308_v29 = vadd.f32 %v276_v24, %v189_v20  ;;  %v277_v34 = vmul.f32 %v2787_v44, %v226_v35 }
  0xcf   :  { %v190_v28 = vadd.f32 %v2766_v7, %v136_v50  ;;  %v447_v46 = vcombine.low %v305_v38, %v306_v3  ;;  %v191_v39 = vadd.f32 %v2768_v56, %v137_v48  ;;  %v192_v49 = vadd.f32 %v2770_v55, %v138_v62 }
  0xd0   :  { %v193_v27 = vadd.f32 %v2772_v54, %v139_v1  ;;  %v448_v19 = vcombine.low %v307_v23, %v308_v29  ;;  %v278_v60 = vmul.f32 %v2789_v43, %v226_v35  ;;  %v279_v0 = vmul.f32 %v2791_v42, %v226_v35 }
  0xd1   :  { %v280_v25 = vmul.f32 %v2793_v41, %v226_v35  ;;  %v309_v22 = vadd.f32 %v277_v34, %v190_v28  ;;  %v3869_v20 = vcombine.low %v2829_v57, %v2831_v33  ;;  %v3870_v24 = vcombine.low %v2835_v47, %v2837_v37  ;;  %v3175_v34 = vld [vmem:[#allocation3 + $0x100] sm:$0xff]  ;;  %v3184_v28 = vld [vmem:[#allocation3 + $0xf8] sm:$0xff] }
  0xd2   :  { %v310_v50 = vadd.f32 %v278_v60, %v191_v39  ;;  %v311_v3 = vadd.f32 %v279_v0, %v192_v49  ;;  %v3871_v35 = vcombine.low %v2851_v32, %v2853_v53  ;;  %v3873_v57 = vcombine.low %v2857_v31, %v2859_v30  ;;  %v3172_v39 = vld [vmem:[#allocation3 + $0x118] sm:$0xff]  ;;  %v3181_v30 = vld [vmem:[#allocation3 + $0xe8] sm:$0xff]  ;;  %v3187_v33 = vld [vmem:[#allocation3 + $0xe0] sm:$0xff] }
  0xd3   :  { %v2924_v45 = vrot.slane %v3869_v20, %v2823_v36  ;;  %v2930_v38 = vrot.slane %v3870_v24, %v2823_v36  ;;  %v312_v48 = vadd.f32 %v280_v25, %v193_v27  ;;  %v2947_v47 = vrot.slane %v413_v61, %v2823_v36 }
  0xd4   :  { %v2936_v62 = vrot.slane %v3871_v35, %v2823_v36  ;;  %v2944_v1 = vrot.slane %v3873_v57, %v2823_v36  ;;  %v2950_v37 = vrot.slane %v414_v51, %v2823_v36  ;;  %v464_v23 = vcombine.low %v309_v22, %v310_v50 }
  0xd5   :  { %3875 = vst [vmem:[#allocation63_spill] sm:$0xff] %v2947_v47  ;;  %v465_v29 = vcombine.low %v311_v3, %v312_v48  ;;  %v2953_v32 = vrot.slane %v430_v26, %v2823_v36  ;;  %v2956_v53 = vrot.slane %v431_v21, %v2823_v36  ;;  %v2963_v31 = vrot.slane %v447_v46, %v2823_v36  ;;  %v3178_v21 = vld [vmem:[#allocation3 + $0x110] sm:$0xff]  ;;  %v3211_v47 = vld [vmem:[#allocation3 + $0xa0] sm:$0xff] }
  0xd6   :  { %3872 = vst [vmem:[#allocation61_spill] sm:$0xff] %v2936_v62  ;;  %3874 = vst [vmem:[#allocation62_spill] sm:$0xff] %v2944_v1  ;;  %v2966_v61 = vrot.slane %v448_v19, %v2823_v36  ;;  %v2969_v51 = vrot.slane %v464_v23, %v2823_v36  ;;  %v108_v46 = vmul.f32 %v2758_v63, %v2774_v52  ;;  %v3214_v1 = vld [vmem:[#allocation3 + $0xb0] sm:$0xff]  ;;  %v3217_v62 = vld [vmem:[#allocation3 + $0x88] sm:$0xff] }
  0xd7   :  { %3876 = vst [vmem:[#allocation64_spill] sm:$0xff] %v2950_v37  ;;  %3877 = vst [vmem:[#allocation65_spill] sm:$0xff] %v2953_v32  ;;  %v2972_v26 = vrot.slane %v465_v29, %v2823_v36  ;;  %v109_v49 = vmul.f32 %v2760_v58, %v2774_v52  ;;  %v110_v27 = vmul.f32 %v2762_v2, %v2774_v52  ;;  %v3205_v32 = vld [vmem:[#allocation3 + $0xa8] sm:$0xff]  ;;  %v3208_v37 = vld [vmem:[#allocation3 + $0xb8] sm:$0xff] }
  0xd8   :  { %3878 = vst [vmem:[#allocation66_spill] sm:$0xff] %v2956_v53  ;;  %3879 = vst [vmem:[#allocation67_spill] sm:$0xff] %v2963_v31  ;;  %v111_v19 = vmul.f32 %v2764_v59, %v2774_v52  ;;  %v162_v60 = vadd.f32 %v2766_v7, %v108_v46  ;;  %v249_v63 = vmul.f32 %v2787_v44, %v2795_v40  ;;  %v3199_v31 = vld [vmem:[#allocation3 + $0xc0] sm:$0xff]  ;;  %v3202_v53 = vld [vmem:[#allocation3 + $0xd0] sm:$0xff] }
  0xd9   :  { %3880 = vst [vmem:[#allocation68_spill] sm:$0xff] %v2966_v61  ;;  %3881 = vst [vmem:[#allocation69_spill] sm:$0xff] %v2969_v51  ;;  %v163_v0 = vadd.f32 %v2768_v56, %v109_v49  ;;  %v164_v25 = vadd.f32 %v2770_v55, %v110_v27  ;;  %v250_v58 = vmul.f32 %v2789_v43, %v2795_v40  ;;  %v3193_v51 = vld [vmem:[#allocation3 + $0xc8] sm:$0xff]  ;;  %v3196_v61 = vld [vmem:[#allocation3 + $0xd8] sm:$0xff] }
  0xda   :  { %3882 = vst [vmem:[#allocation70_spill] sm:$0xff] %v2972_v26  ;;  %v165_v22 = vadd.f32 %v2772_v54, %v111_v19  ;;  %v251_v2 = vmul.f32 %v2791_v42, %v2795_v40  ;;  %v252_v52 = vmul.f32 %v2793_v41, %v2795_v40  ;;  %v281_v59 = vadd.f32 %v249_v63, %v162_v60  ;;  %v3190_v26 = vld [vmem:[#allocation3 + $0xf0] sm:$0xff] }
  0xdb   :  { %v282_v7 = vadd.f32 %v250_v58, %v163_v0 }
  0xdc   :  { %v283_v20 = vadd.f32 %v251_v2, %v164_v25  ;;  %v284_v56 = vadd.f32 %v252_v52, %v165_v22 }
  0xdd   :  { %v345_v24 = vcombine.low %v281_v59, %v282_v7  ;;  %v3883_v7 = vld [vmem:[#allocation10_spill] sm:$0xff] }
  0xde   :  { %v346_v55 = vcombine.low %v283_v20, %v284_v56  ;;  %v3898_v20 = vld [vmem:[#allocation25_spill] sm:$0xff]  ;;  %v3899_v56 = vld [vmem:[#allocation26_spill] sm:$0xff] }
  0xdf   :  { %v353_v35 = vrot.slane %v345_v24, %v2823_v36  ;;  %v3900_v24 = vld [vmem:[#allocation27_spill] sm:$0xff] }
  0xe0   :  { %v360_v43 = vrot.slane %v346_v55, %v2823_v36  ;;  %v3901_v55 = vld [vmem:[#allocation28_spill] sm:$0xff] }
  0xe2   :  { %v361_v41 = vcombine.low %v353_v35, %v360_v43  ;;  %v3907_v35 = vld [vmem:[#allocation34_spill] sm:$0xff]  ;;  %v3908_v43 = vld [vmem:[#allocation35_spill] sm:$0xff] }
  0xf1   :  { %v628_v50 = vpop.f32.mrf.mxu0  ;;  %v699_v54 = vpop.f32.mrf.mxu1 }
  0xf3   :  { %v630_v3 = vpop.f32.mrf.mxu0  ;;  %v701_v48 = vpop.f32.mrf.mxu1 }
  0xf4   :  { %v708_v44 = vcombine.low %v628_v50, %v630_v3  ;;  %v709_v57 = vcombine.low %v699_v54, %v701_v48  ;;  %v3902_v50 = vld [vmem:[#allocation29_spill] sm:$0xff]  ;;  %v3903_v54 = vld [vmem:[#allocation30_spill] sm:$0xff]  ;;  %v3904_v3 = vld [vmem:[#allocation31_spill] sm:$0xff] }
  0xf5   :  { %v3905_v48 = vld [vmem:[#allocation32_spill] sm:$0xff] }
  0xf6   :  { %v716_v42 = vrot.slane %v708_v44, %v2823_v36  ;;  %v723_v40 = vrot.slane %v709_v57, %v2823_v36  ;;  %v3906_v44 = vld [vmem:[#allocation33_spill] sm:$0xff]  ;;  %v3909_v57 = vld [vmem:[#allocation36_spill] sm:$0xff] }
  0xf8   :  { %v724_v23 = vcombine.low %v716_v42, %v723_v40  ;;  %v3910_v42 = vld [vmem:[#allocation37_spill] sm:$0xff]  ;;  %v3911_v40 = vld [vmem:[#allocation38_spill] sm:$0xff] }
  0xfa   :  { %v726_v29 = vadd.f32 %v724_v23, %v361_v41  ;;  %v3912_v41 = vld [vmem:[#allocation39_spill] sm:$0xff]  ;;  %v3913_v23 = vld [vmem:[#allocation40_spill] sm:$0xff] }
  0xfc   :  { %v2167_v46 = vmul.f32 -1.442695, %v726_v29  ;;  %v734_v19 = vrot.slane %v726_v29, 6  ;;  %v3914_v29 = vld [vmem:[#allocation41_spill] sm:$0xff] }
  0xfe   :  { %2242 = vpow2.f32 %v2167_v46  ;;  %v3915_v46 = vld [vmem:[#allocation42_spill] sm:$0xff] }
 0x10b   :  { %v2243_v49 = vpop.eup %2242 }
 0x10c   :  { %v730_v27 = vadd.f32 1.0, %v2243_v49  ;;  %v3916_v49 = vld [vmem:[#allocation43_spill] sm:$0xff] }
 0x10e   :  { %2244 = vrcp.f32 %v730_v27  ;;  %v3917_v27 = vld [vmem:[#allocation44_spill] sm:$0xff] }
 0x10f   :  { %2246 = vtanh.f32 %v734_v19  ;;  %v3918_v19 = vld [vmem:[#allocation45_spill] sm:$0xff] }
 0x11b   :  { %v2245_v60 = vpop.eup %2244 }
 0x11c   :  { %v738_v0 = vrot.slane %v2245_v60, 2  ;;  %v2247_v25 = vpop.eup %2246  ;;  %v744_v2 = vrot.slane %v2245_v60, 4 }
 0x11d   :  { %v741_v22 = vmul.f32 %v2247_v25, %v2245_v60  ;;  %v3919_v60 = vld [vmem:[#allocation46_spill] sm:$0xff]  ;;  %v3921_v25 = vld [vmem:[#allocation48_spill] sm:$0xff] }
 0x11e   :  { %v740_v63 = vmul.f32 0.0, %v738_v0  ;;  %v3920_v0 = vld [vmem:[#allocation47_spill] sm:$0xff] }
 0x120   :  { %v3004_v58 = vadd.f32 %v741_v22, %v740_v63  ;;  %v3922_v22 = vld [vmem:[#allocation49_spill] sm:$0xff]  ;;  %v3923_v63 = vld [vmem:[#allocation50_spill] sm:$0xff] }
 0x122   :  { %2248 = vtanh.f32 %v3004_v58 }
 0x12f   :  { %v2249_v52 = vpop.eup %2248 }
 0x130   :  { %v746_v59 = vmul.f32 %v2249_v52, %v744_v2  ;;  %v3924_v2 = vld [vmem:[#allocation51_spill] sm:$0xff]  ;;  %v3925_v52 = vld [vmem:[#allocation52_spill] sm:$0xff] }
 0x132   :  { %814 = vmatmul.mubr.f32.vlgmr.msra.gmra.mxu0 %v746_v59  ;;  %885 = vmatmul.mubr.f32.vlgmr.msra.gmra.mxu1 %v746_v59  ;;  %v3926_v59 = vld [vmem:[#allocation53_spill] sm:$0xff] }
 0x133   :  { %937 = vmatpush1.msra.mxu0 %v2469_v4  ;;  %1008 = vmatpush1.msra.mxu1 %v2473_v5  ;;  %v3884_v4 = vld [vmem:[#allocation11_spill] sm:$0xff]  ;;  %v3885_v5 = vld [vmem:[#allocation12_spill] sm:$0xff] }
 0x134   :  { %938 = vmatprep.subr.mxu0 %v2475_v6  ;;  %1009 = vmatprep.subr.mxu1 %v3883_v7  ;;  %v3886_v6 = vld [vmem:[#allocation13_spill] sm:$0xff]  ;;  %v3927_v7 = vld [vmem:[#allocation54_spill] sm:$0xff]  ;;  %3940 = vst [vmem:[#allocation12_spill] sm:$0xff] %v3202_v53 }
 0x135   :  { %939 = vmatpush1.msra.mxu0 %v2481_v8  ;;  %1010 = vmatpush1.msra.mxu1 %v2483_v9  ;;  %v3887_v8 = vld [vmem:[#allocation14_spill] sm:$0xff]  ;;  %v3888_v9 = vld [vmem:[#allocation15_spill] sm:$0xff]  ;;  %3941 = vst [vmem:[#allocation13_spill] sm:$0xff] %v3205_v32 }
 0x136   :  { %940 = vmatprep.subr.mxu0 %v2485_v10  ;;  %1011 = vmatprep.subr.mxu1 %v2489_v11  ;;  %v3889_v10 = vld [vmem:[#allocation16_spill] sm:$0xff]  ;;  %v3890_v11 = vld [vmem:[#allocation17_spill] sm:$0xff]  ;;  %3942 = vst [vmem:[#allocation14_spill] sm:$0xff] %v3208_v37  ;;  %3943 = vst [vmem:[#allocation15_spill] sm:$0xff] %v3211_v47 }
 0x137   :  { %941 = vmatpush1.msra.mxu0 %v2491_v12  ;;  %1012 = vmatpush1.msra.mxu1 %v2493_v13  ;;  %v3891_v12 = vld [vmem:[#allocation18_spill] sm:$0xff]  ;;  %v3892_v13 = vld [vmem:[#allocation19_spill] sm:$0xff]  ;;  %3944 = vst [vmem:[#allocation16_spill] sm:$0xff] %v3214_v1 }
 0x138   :  { %942 = vmatprep.subr.mxu0 %v2497_v14  ;;  %1013 = vmatprep.subr.mxu1 %v2499_v15  ;;  %v3893_v14 = vld [vmem:[#allocation20_spill] sm:$0xff]  ;;  %v3894_v15 = vld [vmem:[#allocation21_spill] sm:$0xff] }
 0x139   :  { %943 = vmatpush1.msra.mxu0 %v2503_v16  ;;  %1014 = vmatpush1.msra.mxu1 %v2505_v17  ;;  %v3895_v16 = vld [vmem:[#allocation22_spill] sm:$0xff]  ;;  %v3896_v17 = vld [vmem:[#allocation23_spill] sm:$0xff] }
 0x13a   :  { %944 = vmatprep.subr.mxu0 %v2509_v18  ;;  %1015 = vmatprep.subr.mxu1 %v3884_v4  ;;  %v3897_v18 = vld [vmem:[#allocation24_spill] sm:$0xff]  ;;  %v3928_v4 = vld [vmem:[#allocation55_spill] sm:$0xff] }
 0x13b   :  { %945 = vmatpush1.msra.mxu0 %v3885_v5  ;;  %1016 = vmatpush1.msra.mxu1 %v3886_v6  ;;  %v3929_v5 = vld [vmem:[#allocation56_spill] sm:$0xff]  ;;  %v3930_v6 = vmov 0.0  }
 0x13c   :  { %946 = vmatprep.subr.mxu0 %v3887_v8  ;;  %1017 = vmatprep.subr.mxu1 %v3888_v9  ;;  %v3931_v8 = vld [vmem:[#allocation57_spill] sm:$0xff] }
 0x13d   :  { %947 = vmatpush1.msra.mxu0 %v3889_v10  ;;  %1018 = vmatpush1.msra.mxu1 %v3890_v11  ;;  %v3071_v9 = vld [vmem:[#allocation3 + $0x1e8] sm:$0xff]  ;;  %v3074_v10 = vld [vmem:[#allocation3 + $0x1f8] sm:$0xff] }
 0x13e   :  { %948 = vmatprep.subr.mxu0 %v3891_v12  ;;  %1019 = vmatprep.subr.mxu1 %v3892_v13  ;;  %3932 = vst [vmem:[#allocation10_spill] sm:$0xff] %v3071_v9  ;;  %3933 = vst [vmem:[#allocation11_spill] sm:$0xff] %v3074_v10  ;;  %v3934_v11 = vld [vmem:[#allocation9_spill] sm:$0xff]  ;;  %v3935_v12 = vld [vmem:[#allocation58_spill] sm:$0xff] }
 0x13f   :  { %949 = vmatpush1.msra.mxu0 %v3893_v14  ;;  %1020 = vmatpush1.msra.mxu1 %v3894_v15  ;;  %v3936_v13 = vcombine.low %v3934_v11, %v3935_v12  ;;  %v3937_v15 = vld [vmem:[#allocation59_spill] sm:$0xff] }
 0x140   :  { %950 = vmatprep.subr.mxu0 %v3895_v16  ;;  %1021 = vmatprep.subr.mxu1 %v3896_v17  ;;  %v3938_v16 = vld [vmem:[#allocation60_spill] sm:$0xff] }
 0x141   :  { %951 = vmatpush1.msra.mxu0 %v3897_v18  ;;  %1022 = vmatpush1.msra.mxu1 %v3898_v20  ;;  %v370_v14 = vrot.slane %v3936_v13, %v2823_v36  ;;  %v3939_v17 = vcombine.low %v3937_v15, %v3938_v16  ;;  %v3091_v16 = vld [vmem:[#allocation3 + $0x1e0] sm:$0xff] }
 0x142   :  { %952 = vmatprep.subr.mxu0 %v3899_v56  ;;  %1023 = vmatprep.subr.mxu1 %v3900_v24 }
 0x143   :  { %953 = vmatpush1.msra.mxu0 %v3901_v55  ;;  %1024 = vmatpush1.msra.mxu1 %v3902_v50  ;;  %v377_v18 = vrot.slane %v3939_v17, %v2823_v36  ;;  %v3094_v17 = vld [vmem:[#allocation3 + $0x1f0] sm:$0xff] }
 0x144   :  { %954 = vmatprep.subr.mxu0 %v3903_v54  ;;  %1025 = vmatprep.subr.mxu1 %v3904_v3 }
 0x145   :  { %955 = vmatpush1.msra.mxu0 %v3905_v48  ;;  %1026 = vmatpush1.msra.mxu1 %v3906_v44  ;;  %v378_v20 = vcombine.low %v370_v14, %v377_v18  ;;  %v3097_v18 = vld [vmem:[#allocation3 + $0x1c8] sm:$0xff] }
 0x146   :  { %956 = vmatprep.subr.mxu0 %v3907_v35  ;;  %1027 = vmatprep.subr.mxu1 %v3908_v43 }
 0x147   :  { %957 = vmatpush1.msra.mxu0 %v3909_v57  ;;  %1028 = vmatpush1.msra.mxu1 %v3910_v42 }
 0x148   :  { %958 = vmatprep.subr.mxu0 %v3911_v40  ;;  %1029 = vmatprep.subr.mxu1 %v3912_v41 }
 0x149   :  { %959 = vmatpush1.msra.mxu0 %v3913_v23  ;;  %1030 = vmatpush1.msra.mxu1 %v3914_v29 }
 0x14a   :  { %960 = vmatprep.subr.mxu0 %v3915_v46  ;;  %1031 = vmatprep.subr.mxu1 %v3916_v49 }
 0x14b   :  { %961 = vmatpush1.msra.mxu0 %v3917_v27  ;;  %1032 = vmatpush1.msra.mxu1 %v3918_v19 }
 0x14c   :  { %962 = vmatprep.subr.mxu0 %v3919_v60  ;;  %1033 = vmatprep.subr.mxu1 %v3920_v0 }
 0x14d   :  { %963 = vmatpush1.msra.mxu0 %v3921_v25  ;;  %1034 = vmatpush1.msra.mxu1 %v3922_v22 }
 0x14e   :  { %964 = vmatprep.subr.mxu0 %v3923_v63  ;;  %1035 = vmatprep.subr.mxu1 %v3924_v2 }
 0x14f   :  { %965 = vmatpush1.msra.mxu0 %v3925_v52  ;;  %1036 = vmatpush1.msra.mxu1 %v3926_v59 }
 0x150   :  { %966 = vmatprep.subr.mxu0 %v3927_v7  ;;  %1037 = vmatprep.subr.mxu1 %v3928_v4 }
 0x151   :  { %967 = vmatpush1.msra.mxu0 %v3929_v5  ;;  %1000 = vmatprep.mubr.f32.mxu0 %v3930_v6 }
 0x152   :  { %1038 = vmatpush1.msra.mxu1 %v3931_v8  ;;  %1071 = vmatprep.mubr.f32.mxu1 %v3930_v6 }
 0x153   :  { %1123 = vmatprep.subr.mxu0 %v3071_v9  ;;  %1194 = vmatprep.subr.mxu1 %v3074_v10 }
 0x1f2   :  { %v815_v56 = vpop.f32.mrf.mxu0  ;;  %v886_v24 = vpop.f32.mrf.mxu1 }
 0x1f4   :  { %v817_v55 = vpop.f32.mrf.mxu0  ;;  %v888_v50 = vpop.f32.mrf.mxu1 }
 0x1f5   :  { %v895_v54 = vcombine.low %v815_v56, %v817_v55  ;;  %v896_v3 = vcombine.low %v886_v24, %v888_v50  ;;  %v3106_v56 = vld [vmem:[#allocation3 + $0x1d0] sm:$0xff]  ;;  %v3109_v24 = vld [vmem:[#allocation3 + $0x1a8] sm:$0xff]  ;;  %v3112_v55 = vld [vmem:[#allocation3 + $0x1b8] sm:$0xff] }
 0x1f6   :  { %v3115_v50 = vld [vmem:[#allocation3 + $0x1a0] sm:$0xff] }
 0x1f7   :  { %v903_v48 = vrot.slane %v895_v54, %v2823_v36  ;;  %v910_v44 = vrot.slane %v896_v3, %v2823_v36  ;;  %v3118_v54 = vld [vmem:[#allocation3 + $0x1b0] sm:$0xff]  ;;  %v3121_v3 = vld [vmem:[#allocation3 + $0x188] sm:$0xff] }
 0x1f9   :  { %v911_v35 = vcombine.low %v903_v48, %v910_v44  ;;  %v3124_v48 = vld [vmem:[#allocation3 + $0x198] sm:$0xff]  ;;  %v3127_v44 = vld [vmem:[#allocation3 + $0x180] sm:$0xff] }
 0x1fb   :  { %v913_v43 = vadd.f32 %v911_v35, %v378_v20  ;;  %v3103_v20 = vld [vmem:[#allocation3 + $0x1c0] sm:$0xff]  ;;  %v3130_v35 = vld [vmem:[#allocation3 + $0x190] sm:$0xff] }
 0x1fd   :  { %v2168_v57 = vmul.f32 -1.442695, %v913_v43  ;;  %v921_v41 = vrot.slane %v913_v43, 6  ;;  %v3133_v43 = vld [vmem:[#allocation3 + $0x168] sm:$0xff] }
 0x1ff   :  { %2250 = vpow2.f32 %v2168_v57  ;;  %v3136_v57 = vld [vmem:[#allocation3 + $0x178] sm:$0xff] }
 0x20c   :  { %v2251_v42 = vpop.eup %2250 }
 0x20d   :  { %v917_v40 = vadd.f32 1.0, %v2251_v42  ;;  %v3139_v42 = vld [vmem:[#allocation3 + $0x160] sm:$0xff] }
 0x20f   :  { %2252 = vrcp.f32 %v917_v40  ;;  %v3142_v40 = vld [vmem:[#allocation3 + $0x170] sm:$0xff] }
 0x210   :  { %2254 = vtanh.f32 %v921_v41  ;;  %v3145_v41 = vld [vmem:[#allocation3 + $0x148] sm:$0xff] }
 0x21c   :  { %v2253_v23 = vpop.eup %2252 }
 0x21d   :  { %v925_v29 = vrot.slane %v2253_v23, 2  ;;  %v2255_v46 = vpop.eup %2254  ;;  %v931_v13 = vrot.slane %v2253_v23, 4 }
 0x21e   :  { %v928_v49 = vmul.f32 %v2255_v46, %v2253_v23  ;;  %v3148_v23 = vld [vmem:[#allocation3 + $0x158] sm:$0xff]  ;;  %v3154_v46 = vld [vmem:[#allocation3 + $0x150] sm:$0xff] }
 0x21f   :  { %v927_v11 = vmul.f32 %v925_v29, %v3004_v58  ;;  %v3100_v58 = vld [vmem:[#allocation3 + $0x1d8] sm:$0xff]  ;;  %v3151_v29 = vld [vmem:[#allocation3 + $0x140] sm:$0xff] }
 0x221   :  { %v3088_v12 = vadd.f32 %v928_v49, %v927_v11  ;;  %v3157_v49 = vld [vmem:[#allocation3 + $0x128] sm:$0xff]  ;;  %v3160_v11 = vld [vmem:[#allocation3 + $0x138] sm:$0xff] }
 0x223   :  { %2256 = vtanh.f32 %v3088_v12 }
 0x230   :  { %v2257_v14 = vpop.eup %2256 }
 0x231   :  { %v933_v15 = vmul.f32 %v2257_v14, %v931_v13  ;;  %v3163_v13 = vld [vmem:[#allocation3 + $0x120] sm:$0xff]  ;;  %v3166_v14 = vld [vmem:[#allocation3 + $0x130] sm:$0xff] }
 0x233   :  { %1001 = vmatmul.mubr.f32.vlgmr.msra.gmra.mxu0 %v933_v15  ;;  %1072 = vmatmul.mubr.f32.vlgmr.msra.gmra.mxu1 %v933_v15  ;;  %v3169_v15 = vld [vmem:[#allocation3 + $0x108] sm:$0xff] }
 0x234   :  { %1124 = vmatpush1.msra.mxu0 %v3091_v16  ;;  %1195 = vmatpush1.msra.mxu1 %v3094_v17 }
 0x235   :  { %1125 = vmatprep.subr.mxu0 %v3097_v18  ;;  %1196 = vmatprep.subr.mxu1 %v3100_v58 }
 0x236   :  { %1126 = vmatpush1.msra.mxu0 %v3103_v20  ;;  %1197 = vmatpush1.msra.mxu1 %v3106_v56 }
 0x237   :  { %1127 = vmatprep.subr.mxu0 %v3109_v24  ;;  %1198 = vmatprep.subr.mxu1 %v3112_v55 }
 0x238   :  { %1128 = vmatpush1.msra.mxu0 %v3115_v50  ;;  %1199 = vmatpush1.msra.mxu1 %v3118_v54 }
 0x239   :  { %1129 = vmatprep.subr.mxu0 %v3121_v3  ;;  %1200 = vmatprep.subr.mxu1 %v3124_v48 }
 0x23a   :  { %1130 = vmatpush1.msra.mxu0 %v3127_v44  ;;  %1201 = vmatpush1.msra.mxu1 %v3130_v35 }
 0x23b   :  { %1131 = vmatprep.subr.mxu0 %v3133_v43  ;;  %1202 = vmatprep.subr.mxu1 %v3136_v57 }
 0x23c   :  { %1132 = vmatpush1.msra.mxu0 %v3139_v42  ;;  %1203 = vmatpush1.msra.mxu1 %v3142_v40 }
 0x23d   :  { %1133 = vmatprep.subr.mxu0 %v3145_v41  ;;  %1204 = vmatprep.subr.mxu1 %v3148_v23 }
 0x23e   :  { %1134 = vmatpush1.msra.mxu0 %v3151_v29  ;;  %1205 = vmatpush1.msra.mxu1 %v3154_v46 }
 0x23f   :  { %1135 = vmatprep.subr.mxu0 %v3157_v49  ;;  %1206 = vmatprep.subr.mxu1 %v3160_v11 }
 0x240   :  { %1136 = vmatpush1.msra.mxu0 %v3163_v13  ;;  %1207 = vmatpush1.msra.mxu1 %v3166_v14 }
 0x241   :  { %1137 = vmatprep.subr.mxu0 %v3169_v15  ;;  %1208 = vmatprep.subr.mxu1 %v3172_v39 }
 0x242   :  { %1138 = vmatpush1.msra.mxu0 %v3175_v34  ;;  %1209 = vmatpush1.msra.mxu1 %v3178_v21 }
 0x243   :  { %1139 = vmatprep.subr.mxu0 %v3181_v30  ;;  %1210 = vmatprep.subr.mxu1 %v3184_v28 }
 0x244   :  { %1140 = vmatpush1.msra.mxu0 %v3187_v33  ;;  %1211 = vmatpush1.msra.mxu1 %v3190_v26 }
 0x245   :  { %1141 = vmatprep.subr.mxu0 %v3193_v51  ;;  %1212 = vmatprep.subr.mxu1 %v3196_v61 }
 0x246   :  { %1142 = vmatpush1.msra.mxu0 %v3199_v31  ;;  %1213 = vmatpush1.msra.mxu1 %v3202_v53  ;;  %v3220_v53 = vld [vmem:[#allocation3 + $0x98] sm:$0xff] }
 0x247   :  { %1143 = vmatprep.subr.mxu0 %v3205_v32  ;;  %1214 = vmatprep.subr.mxu1 %v3208_v37  ;;  %3945 = vst [vmem:[#allocation17_spill] sm:$0xff] %v3220_v53  ;;  %v3223_v32 = vld [vmem:[#allocation3 + $0x80] sm:$0xff]  ;;  %v3226_v37 = vld [vmem:[#allocation3 + $0x90] sm:$0xff] }
 0x248   :  { %1144 = vmatpush1.msra.mxu0 %v3211_v47  ;;  %1215 = vmatpush1.msra.mxu1 %v3214_v1  ;;  %3946 = vst [vmem:[#allocation18_spill] sm:$0xff] %v3223_v32  ;;  %3947 = vst [vmem:[#allocation19_spill] sm:$0xff] %v3226_v37  ;;  %v3229_v47 = vld [vmem:[#allocation3 + $0x68] sm:$0xff]  ;;  %v3232_v1 = vld [vmem:[#allocation3 + $0x78] sm:$0xff] }
 0x249   :  { %1145 = vmatprep.subr.mxu0 %v3217_v62  ;;  %1216 = vmatprep.subr.mxu1 %v3220_v53  ;;  %3948 = vst [vmem:[#allocation20_spill] sm:$0xff] %v3229_v47  ;;  %3949 = vst [vmem:[#allocation21_spill] sm:$0xff] %v3232_v1 }
 0x24a   :  { %1146 = vmatpush1.msra.mxu0 %v3223_v32  ;;  %1217 = vmatpush1.msra.mxu1 %v3226_v37 }
 0x24b   :  { %1147 = vmatprep.subr.mxu0 %v3229_v47  ;;  %1218 = vmatprep.subr.mxu1 %v3232_v1 }
 0x24c   :  { %1148 = vmatpush1.msra.mxu0 %v3917_v27  ;;  %1219 = vmatpush1.msra.mxu1 %v3918_v19 }
 0x24d   :  { %1149 = vmatprep.subr.mxu0 %v3919_v60  ;;  %1220 = vmatprep.subr.mxu1 %v3920_v0 }
 0x24e   :  { %1150 = vmatpush1.msra.mxu0 %v3921_v25  ;;  %1221 = vmatpush1.msra.mxu1 %v3922_v22 }
 0x24f   :  { %1151 = vmatprep.subr.mxu0 %v3923_v63  ;;  %1222 = vmatprep.subr.mxu1 %v3924_v2 }
 0x250   :  { %1152 = vmatpush1.msra.mxu0 %v3925_v52  ;;  %1223 = vmatpush1.msra.mxu1 %v3926_v59  ;;  %v3950_v59 = vcombine.low %v2924_v45, %v2930_v38 }
 0x251   :  { %1153 = vmatprep.subr.mxu0 %v3927_v7  ;;  %1224 = vmatprep.subr.mxu1 %v3928_v4 }
 0x252   :  { %1154 = vmatpush1.msra.mxu0 %v3929_v5  ;;  %1187 = vmatprep.mubr.f32.mxu0 %v3930_v6 }
 0x253   :  { %1225 = vmatpush1.msra.mxu1 %v3931_v8  ;;  %1258 = vmatprep.mubr.f32.mxu1 %v3930_v6 }
 0x254   :  { %1310 = vmatprep.subr.mxu0 %v3071_v9  ;;  %1381 = vmatprep.subr.mxu1 %v3074_v10 }
 0x2f3   :  { %v1002_v27 = vpop.f32.mrf.mxu0  ;;  %v1073_v19 = vpop.f32.mrf.mxu1 }
 0x2f5   :  { %v1004_v60 = vpop.f32.mrf.mxu0  ;;  %v1075_v0 = vpop.f32.mrf.mxu1 }
 0x2f6   :  { %v1082_v25 = vcombine.low %v1002_v27, %v1004_v60  ;;  %v1083_v22 = vcombine.low %v1073_v19, %v1075_v0 }
 0x2f8   :  { %v1090_v63 = vrot.slane %v1082_v25, %v2823_v36  ;;  %v1097_v2 = vrot.slane %v1083_v22, %v2823_v36  ;;  %v3955_v22 = vld [vmem:[#allocation16_spill] sm:$0xff] }
 0x2fa   :  { %v1098_v52 = vcombine.low %v1090_v63, %v1097_v2  ;;  %v3310_v63 = vld [vmem:[#allocation3 + $0x60] sm:$0xff]  ;;  %v3313_v2 = vld [vmem:[#allocation3 + $0x70] sm:$0xff] }
 0x2fb   :  { %3956 = vst [vmem:[#allocation22_spill] sm:$0xff] %v3310_v63  ;;  %3957 = vst [vmem:[#allocation23_spill] sm:$0xff] %v3313_v2 }
 0x2fc   :  { %v1100_v7 = vadd.f32 %v1098_v52, %v3950_v59  ;;  %v3316_v52 = vld [vmem:[#allocation3 + $0x48] sm:$0xff]  ;;  %v3319_v59 = vld [vmem:[#allocation3 + $0x58] sm:$0xff] }
 0x2fd   :  { %3958 = vst [vmem:[#allocation24_spill] sm:$0xff] %v3316_v52  ;;  %3959 = vst [vmem:[#allocation25_spill] sm:$0xff] %v3319_v59 }
 0x2fe   :  { %v2169_v4 = vmul.f32 -1.442695, %v1100_v7  ;;  %v1108_v10 = vrot.slane %v1100_v7, 6  ;;  %v3322_v7 = vld [vmem:[#allocation3 + $0x40] sm:$0xff] }
 0x2ff   :  { %3960 = vst [vmem:[#allocation26_spill] sm:$0xff] %v3322_v7 }
 0x300   :  { %2258 = vpow2.f32 %v2169_v4  ;;  %v3325_v4 = vld [vmem:[#allocation3 + $0x50] sm:$0xff] }
 0x301   :  { %3961 = vst [vmem:[#allocation27_spill] sm:$0xff] %v3325_v4 }
 0x30d   :  { %v2259_v5 = vpop.eup %2258 }
 0x30e   :  { %v1104_v8 = vadd.f32 1.0, %v2259_v5  ;;  %v3328_v5 = vld [vmem:[#allocation3 + $0x28] sm:$0xff] }
 0x30f   :  { %3962 = vst [vmem:[#allocation28_spill] sm:$0xff] %v3328_v5 }
 0x310   :  { %2260 = vrcp.f32 %v1104_v8  ;;  %v3331_v8 = vld [vmem:[#allocation3 + $0x38] sm:$0xff] }
 0x311   :  { %2262 = vtanh.f32 %v1108_v10  ;;  %v3953_v10 = vld [vmem:[#allocation14_spill] sm:$0xff]  ;;  %3963 = vst [vmem:[#allocation29_spill] sm:$0xff] %v3331_v8 }
 0x31d   :  { %v2261_v9 = vpop.eup %2260 }
 0x31e   :  { %v1112_v6 = vrot.slane %v2261_v9, 2  ;;  %v2263_v27 = vpop.eup %2262  ;;  %v1118_v25 = vrot.slane %v2261_v9, 4 }
 0x31f   :  { %v1115_v19 = vmul.f32 %v2263_v27, %v2261_v9  ;;  %v3952_v9 = vld [vmem:[#allocation13_spill] sm:$0xff] }
 0x320   :  { %v1114_v60 = vmul.f32 %v1112_v6, %v3088_v12  ;;  %v3951_v6 = vld [vmem:[#allocation12_spill] sm:$0xff]  ;;  %v3954_v12 = vld [vmem:[#allocation15_spill] sm:$0xff] }
 0x321   :  { %v3334_v27 = vld [vmem:[#allocation3 + $0x20] sm:$0xff] }
 0x322   :  { %v3259_v0 = vadd.f32 %v1115_v19, %v1114_v60  ;;  %3964 = vst [vmem:[#allocation30_spill] sm:$0xff] %v3334_v27  ;;  %v3337_v19 = vld [vmem:[#allocation3 + $0x30] sm:$0xff]  ;;  %v3340_v60 = vld [vmem:[#allocation3 + $0x8] sm:$0xff] }
 0x323   :  { %3965 = vst [vmem:[#allocation31_spill] sm:$0xff] %v3337_v19  ;;  %3966 = vst [vmem:[#allocation32_spill] sm:$0xff] %v3340_v60 }
 0x324   :  { %2264 = vtanh.f32 %v3259_v0 }
 0x331   :  { %v2265_v45 = vpop.eup %2264 }
 0x332   :  { %v1120_v38 = vmul.f32 %v2265_v45, %v1118_v25  ;;  %v3343_v25 = vld [vmem:[#allocation3 + $0x18] sm:$0xff]  ;;  %v3346_v45 = vld [vmem:[#allocation3] sm:$0xff] }
 0x333   :  { %3967 = vst [vmem:[#allocation33_spill] sm:$0xff] %v3343_v25  ;;  %3968 = vst [vmem:[#allocation34_spill] sm:$0xff] %v3346_v45 }
 0x334   :  { %1188 = vmatmul.mubr.f32.vlgmr.msra.gmra.mxu0 %v1120_v38  ;;  %1259 = vmatmul.mubr.f32.vlgmr.msra.gmra.mxu1 %v1120_v38  ;;  %v3969_v38 = vmov 0.0  }
 0x335   :  { %1311 = vmatpush1.msra.mxu0 %v3091_v16  ;;  %1382 = vmatpush1.msra.mxu1 %v3094_v17 }
 0x336   :  { %1312 = vmatprep.subr.mxu0 %v3097_v18  ;;  %1383 = vmatprep.subr.mxu1 %v3100_v58 }
 0x337   :  { %1313 = vmatpush1.msra.mxu0 %v3103_v20  ;;  %1384 = vmatpush1.msra.mxu1 %v3106_v56 }
 0x338   :  { %1314 = vmatprep.subr.mxu0 %v3109_v24  ;;  %1385 = vmatprep.subr.mxu1 %v3112_v55 }
 0x339   :  { %1315 = vmatpush1.msra.mxu0 %v3115_v50  ;;  %1386 = vmatpush1.msra.mxu1 %v3118_v54 }
 0x33a   :  { %1316 = vmatprep.subr.mxu0 %v3121_v3  ;;  %1387 = vmatprep.subr.mxu1 %v3124_v48 }
 0x33b   :  { %1317 = vmatpush1.msra.mxu0 %v3127_v44  ;;  %1388 = vmatpush1.msra.mxu1 %v3130_v35 }
 0x33c   :  { %1318 = vmatprep.subr.mxu0 %v3133_v43  ;;  %1389 = vmatprep.subr.mxu1 %v3136_v57 }
 0x33d   :  { %1319 = vmatpush1.msra.mxu0 %v3139_v42  ;;  %1390 = vmatpush1.msra.mxu1 %v3142_v40 }
 0x33e   :  { %1320 = vmatprep.subr.mxu0 %v3145_v41  ;;  %1391 = vmatprep.subr.mxu1 %v3148_v23 }
 0x33f   :  { %1321 = vmatpush1.msra.mxu0 %v3151_v29  ;;  %1392 = vmatpush1.msra.mxu1 %v3154_v46 }
 0x340   :  { %1322 = vmatprep.subr.mxu0 %v3157_v49  ;;  %1393 = vmatprep.subr.mxu1 %v3160_v11 }
 0x341   :  { %1323 = vmatpush1.msra.mxu0 %v3163_v13  ;;  %1394 = vmatpush1.msra.mxu1 %v3166_v14 }
 0x342   :  { %1324 = vmatprep.subr.mxu0 %v3169_v15  ;;  %1395 = vmatprep.subr.mxu1 %v3172_v39 }
 0x343   :  { %1325 = vmatpush1.msra.mxu0 %v3175_v34  ;;  %1396 = vmatpush1.msra.mxu1 %v3178_v21 }
 0x344   :  { %1326 = vmatprep.subr.mxu0 %v3181_v30  ;;  %1397 = vmatprep.subr.mxu1 %v3184_v28 }
 0x345   :  { %1327 = vmatpush1.msra.mxu0 %v3187_v33  ;;  %1398 = vmatpush1.msra.mxu1 %v3190_v26 }
 0x346   :  { %1328 = vmatprep.subr.mxu0 %v3193_v51  ;;  %1399 = vmatprep.subr.mxu1 %v3196_v61 }
 0x347   :  { %1329 = vmatpush1.msra.mxu0 %v3199_v31  ;;  %1400 = vmatpush1.msra.mxu1 %v3951_v6 }
 0x348   :  { %1330 = vmatprep.subr.mxu0 %v3952_v9  ;;  %1401 = vmatprep.subr.mxu1 %v3953_v10 }
 0x349   :  { %1331 = vmatpush1.msra.mxu0 %v3954_v12  ;;  %1402 = vmatpush1.msra.mxu1 %v3955_v22 }
 0x34a   :  { %1332 = vmatprep.subr.mxu0 %v3217_v62  ;;  %1403 = vmatprep.subr.mxu1 %v3220_v53 }
 0x34b   :  { %1333 = vmatpush1.msra.mxu0 %v3223_v32  ;;  %1404 = vmatpush1.msra.mxu1 %v3226_v37 }
 0x34c   :  { %1334 = vmatprep.subr.mxu0 %v3229_v47  ;;  %1405 = vmatprep.subr.mxu1 %v3232_v1  ;;  %v3974_v1 = vld [vmem:[#allocation62_spill] sm:$0xff] }
 0x34d   :  { %1335 = vmatpush1.msra.mxu0 %v3310_v63  ;;  %1406 = vmatpush1.msra.mxu1 %v3313_v2  ;;  %v3973_v63 = vld [vmem:[#allocation61_spill] sm:$0xff] }
 0x34e   :  { %1336 = vmatprep.subr.mxu0 %v3316_v52  ;;  %1407 = vmatprep.subr.mxu1 %v3319_v59 }
 0x34f   :  { %1337 = vmatpush1.msra.mxu0 %v3322_v7  ;;  %1408 = vmatpush1.msra.mxu1 %v3325_v4 }
 0x350   :  { %1338 = vmatprep.subr.mxu0 %v3328_v5  ;;  %1409 = vmatprep.subr.mxu1 %v3331_v8  ;;  %v3350_v8 = vld [vmem:[#allocation3 + $0x10] sm:$0xff] }
 0x351   :  { %1339 = vmatpush1.msra.mxu0 %v3334_v27  ;;  %1410 = vmatpush1.msra.mxu1 %v3337_v19  ;;  %3970 = vst [vmem:[#allocation35_spill] sm:$0xff] %v3350_v8  ;;  %v3971_v19 = vld [vmem:[#allocation10_spill] sm:$0xff]  ;;  %v3972_v27 = vld [vmem:[#allocation11_spill] sm:$0xff] }
 0x352   :  { %1340 = vmatprep.subr.mxu0 %v3340_v60  ;;  %1411 = vmatprep.subr.mxu1 %v3343_v25 }
 0x353   :  { %1341 = vmatpush1.msra.mxu0 %v3346_v45  ;;  %1374 = vmatprep.mubr.f32.mxu0 %v3969_v38 }
 0x354   :  { %1412 = vmatpush1.msra.mxu1 %v3350_v8  ;;  %1445 = vmatprep.mubr.f32.mxu1 %v3969_v38  ;;  %v3975_v8 = vcombine.low %v3973_v63, %v3974_v1 }
 0x355   :  { %1497 = vmatprep.subr.mxu0 %v3971_v19  ;;  %1568 = vmatprep.subr.mxu1 %v3972_v27 }
 0x3f4   :  { %v1189_v60 = vpop.f32.mrf.mxu0  ;;  %v1260_v5 = vpop.f32.mrf.mxu1 }
 0x3f6   :  { %v1191_v4 = vpop.f32.mrf.mxu0  ;;  %v1262_v25 = vpop.f32.mrf.mxu1 }
 0x3f7   :  { %v1269_v7 = vcombine.low %v1189_v60, %v1191_v4  ;;  %v1270_v59 = vcombine.low %v1260_v5, %v1262_v25  ;;  %v3986_v25 = vld [vmem:[#allocation27_spill] sm:$0xff] }
 0x3f9   :  { %v1277_v45 = vrot.slane %v1269_v7, %v2823_v36  ;;  %v1284_v52 = vrot.slane %v1270_v59, %v2823_v36  ;;  %v3982_v59 = vld [vmem:[#allocation23_spill] sm:$0xff] }
 0x3fb   :  { %v1285_v2 = vcombine.low %v1277_v45, %v1284_v52  ;;  %v3987_v45 = vld [vmem:[#allocation28_spill] sm:$0xff] }
 0x3fd   :  { %v1287_v47 = vadd.f32 %v1285_v2, %v3975_v8  ;;  %v3981_v2 = vld [vmem:[#allocation22_spill] sm:$0xff]  ;;  %v3983_v8 = vld [vmem:[#allocation24_spill] sm:$0xff] }
 0x3ff   :  { %v2170_v38 = vmul.f32 -1.442695, %v1287_v47  ;;  %v1295_v27 = vrot.slane %v1287_v47, 6  ;;  %v3976_v47 = vld [vmem:[#allocation17_spill] sm:$0xff] }
 0x401   :  { %2266 = vpow2.f32 %v2170_v38  ;;  %v3988_v38 = vld [vmem:[#allocation29_spill] sm:$0xff] }
 0x40e   :  { %v2267_v19 = vpop.eup %2266 }
 0x40f   :  { %v1291_v37 = vadd.f32 1.0, %v2267_v19  ;;  %v3985_v19 = vld [vmem:[#allocation26_spill] sm:$0xff] }
 0x411   :  { %2268 = vrcp.f32 %v1291_v37  ;;  %v3977_v37 = vld [vmem:[#allocation18_spill] sm:$0xff] }
 0x412   :  { %2270 = vtanh.f32 %v1295_v27  ;;  %v3984_v27 = vld [vmem:[#allocation25_spill] sm:$0xff] }
 0x41e   :  { %v2269_v32 = vpop.eup %2268 }
 0x41f   :  { %v1299_v53 = vrot.slane %v2269_v32, 2  ;;  %v2271_v4 = vpop.eup %2270  ;;  %v1305_v52 = vrot.slane %v2269_v32, 4 }
 0x420   :  { %v1302_v5 = vmul.f32 %v2271_v4, %v2269_v32  ;;  %v3978_v32 = vld [vmem:[#allocation19_spill] sm:$0xff]  ;;  %v3989_v4 = vld [vmem:[#allocation30_spill] sm:$0xff] }
 0x421   :  { %v1301_v7 = vmul.f32 %v1299_v53, %v3259_v0  ;;  %v3979_v53 = vld [vmem:[#allocation20_spill] sm:$0xff]  ;;  %v3980_v0 = vld [vmem:[#allocation21_spill] sm:$0xff] }
 0x423   :  { %v3362_v60 = vadd.f32 %v1302_v5, %v1301_v7  ;;  %v3990_v5 = vld [vmem:[#allocation31_spill] sm:$0xff]  ;;  %v3991_v7 = vld [vmem:[#allocation32_spill] sm:$0xff] }
 0x425   :  { %2272 = vtanh.f32 %v3362_v60 }
 0x432   :  { %v2273_v1 = vpop.eup %2272 }
 0x433   :  { %v1307_v63 = vmul.f32 %v2273_v1, %v1305_v52  ;;  %v3992_v52 = vld [vmem:[#allocation33_spill] sm:$0xff]  ;;  %v3993_v1 = vld [vmem:[#allocation34_spill] sm:$0xff] }
 0x435   :  { %1375 = vmatmul.mubr.f32.vlgmr.msra.gmra.mxu0 %v1307_v63  ;;  %1446 = vmatmul.mubr.f32.vlgmr.msra.gmra.mxu1 %v1307_v63  ;;  %v3994_v63 = vmov 0.0  }
 0x436   :  { %1498 = vmatpush1.msra.mxu0 %v3091_v16  ;;  %1569 = vmatpush1.msra.mxu1 %v3094_v17 }
 0x437   :  { %1499 = vmatprep.subr.mxu0 %v3097_v18  ;;  %1570 = vmatprep.subr.mxu1 %v3100_v58 }
 0x438   :  { %1500 = vmatpush1.msra.mxu0 %v3103_v20  ;;  %1571 = vmatpush1.msra.mxu1 %v3106_v56 }
 0x439   :  { %1501 = vmatprep.subr.mxu0 %v3109_v24  ;;  %1572 = vmatprep.subr.mxu1 %v3112_v55 }
 0x43a   :  { %1502 = vmatpush1.msra.mxu0 %v3115_v50  ;;  %1573 = vmatpush1.msra.mxu1 %v3118_v54 }
 0x43b   :  { %1503 = vmatprep.subr.mxu0 %v3121_v3  ;;  %1574 = vmatprep.subr.mxu1 %v3124_v48 }
 0x43c   :  { %1504 = vmatpush1.msra.mxu0 %v3127_v44  ;;  %1575 = vmatpush1.msra.mxu1 %v3130_v35 }
 0x43d   :  { %1505 = vmatprep.subr.mxu0 %v3133_v43  ;;  %1576 = vmatprep.subr.mxu1 %v3136_v57 }
 0x43e   :  { %1506 = vmatpush1.msra.mxu0 %v3139_v42  ;;  %1577 = vmatpush1.msra.mxu1 %v3142_v40 }
 0x43f   :  { %1507 = vmatprep.subr.mxu0 %v3145_v41  ;;  %1578 = vmatprep.subr.mxu1 %v3148_v23 }
 0x440   :  { %1508 = vmatpush1.msra.mxu0 %v3151_v29  ;;  %1579 = vmatpush1.msra.mxu1 %v3154_v46 }
 0x441   :  { %1509 = vmatprep.subr.mxu0 %v3157_v49  ;;  %1580 = vmatprep.subr.mxu1 %v3160_v11 }
 0x442   :  { %1510 = vmatpush1.msra.mxu0 %v3163_v13  ;;  %1581 = vmatpush1.msra.mxu1 %v3166_v14 }
 0x443   :  { %1511 = vmatprep.subr.mxu0 %v3169_v15  ;;  %1582 = vmatprep.subr.mxu1 %v3172_v39 }
 0x444   :  { %1512 = vmatpush1.msra.mxu0 %v3175_v34  ;;  %1583 = vmatpush1.msra.mxu1 %v3178_v21 }
 0x445   :  { %1513 = vmatprep.subr.mxu0 %v3181_v30  ;;  %1584 = vmatprep.subr.mxu1 %v3184_v28 }
 0x446   :  { %1514 = vmatpush1.msra.mxu0 %v3187_v33  ;;  %1585 = vmatpush1.msra.mxu1 %v3190_v26 }
 0x447   :  { %1515 = vmatprep.subr.mxu0 %v3193_v51  ;;  %1586 = vmatprep.subr.mxu1 %v3196_v61 }
 0x448   :  { %1516 = vmatpush1.msra.mxu0 %v3199_v31  ;;  %1587 = vmatpush1.msra.mxu1 %v3951_v6 }
 0x449   :  { %1517 = vmatprep.subr.mxu0 %v3952_v9  ;;  %1588 = vmatprep.subr.mxu1 %v3953_v10 }
 0x44a   :  { %1518 = vmatpush1.msra.mxu0 %v3954_v12  ;;  %1589 = vmatpush1.msra.mxu1 %v3955_v22 }
 0x44b   :  { %1519 = vmatprep.subr.mxu0 %v3217_v62  ;;  %1590 = vmatprep.subr.mxu1 %v3976_v47 }
 0x44c   :  { %1520 = vmatpush1.msra.mxu0 %v3977_v37  ;;  %1591 = vmatpush1.msra.mxu1 %v3978_v32 }
 0x44d   :  { %1521 = vmatprep.subr.mxu0 %v3979_v53  ;;  %1592 = vmatprep.subr.mxu1 %v3980_v0  ;;  %v3999_v0 = vld [vmem:[#allocation64_spill] sm:$0xff] }
 0x44e   :  { %1522 = vmatpush1.msra.mxu0 %v3981_v2  ;;  %1593 = vmatpush1.msra.mxu1 %v3982_v59  ;;  %v3998_v2 = vld [vmem:[#allocation63_spill] sm:$0xff] }
 0x44f   :  { %1523 = vmatprep.subr.mxu0 %v3983_v8  ;;  %1594 = vmatprep.subr.mxu1 %v3984_v27  ;;  %v3995_v27 = vld [vmem:[#allocation35_spill] sm:$0xff] }
 0x450   :  { %1524 = vmatpush1.msra.mxu0 %v3985_v19  ;;  %1595 = vmatpush1.msra.mxu1 %v3986_v25  ;;  %v3996_v25 = vld [vmem:[#allocation10_spill] sm:$0xff] }
 0x451   :  { %1525 = vmatprep.subr.mxu0 %v3987_v45  ;;  %1596 = vmatprep.subr.mxu1 %v3988_v38  ;;  %v3997_v45 = vld [vmem:[#allocation11_spill] sm:$0xff] }
 0x452   :  { %1526 = vmatpush1.msra.mxu0 %v3989_v4  ;;  %1597 = vmatpush1.msra.mxu1 %v3990_v5 }
 0x453   :  { %1527 = vmatprep.subr.mxu0 %v3991_v7  ;;  %1598 = vmatprep.subr.mxu1 %v3992_v52 }
 0x454   :  { %1528 = vmatpush1.msra.mxu0 %v3993_v1  ;;  %1561 = vmatprep.mubr.f32.mxu0 %v3994_v63 }
 0x455   :  { %1599 = vmatpush1.msra.mxu1 %v3995_v27  ;;  %1632 = vmatprep.mubr.f32.mxu1 %v3994_v63  ;;  %v4000_v27 = vcombine.low %v3998_v2, %v3999_v0 }
 0x456   :  { %1684 = vmatprep.subr.mxu0 %v3996_v25  ;;  %1755 = vmatprep.subr.mxu1 %v3997_v45 }
 0x4f5   :  { %v1376_v38 = vpop.f32.mrf.mxu0  ;;  %v1447_v4 = vpop.f32.mrf.mxu1 }
 0x4f7   :  { %v1378_v19 = vpop.f32.mrf.mxu0  ;;  %v1449_v5 = vpop.f32.mrf.mxu1 }
 0x4f8   :  { %v1456_v8 = vcombine.low %v1376_v38, %v1378_v19  ;;  %v1457_v7 = vcombine.low %v1447_v4, %v1449_v5 }
 0x4fa   :  { %v1464_v52 = vrot.slane %v1456_v8, %v2823_v36  ;;  %v1471_v1 = vrot.slane %v1457_v7, %v2823_v36  ;;  %v4010_v7 = vld [vmem:[#allocation26_spill] sm:$0xff] }
 0x4fc   :  { %v1472_v59 = vcombine.low %v1464_v52, %v1471_v1  ;;  %v4011_v52 = vld [vmem:[#allocation27_spill] sm:$0xff]  ;;  %v4012_v1 = vld [vmem:[#allocation28_spill] sm:$0xff] }
 0x4fe   :  { %v1474_v53 = vadd.f32 %v1472_v59, %v4000_v27  ;;  %v4006_v59 = vld [vmem:[#allocation22_spill] sm:$0xff]  ;;  %v4007_v27 = vld [vmem:[#allocation23_spill] sm:$0xff] }
 0x500   :  { %v2171_v63 = vmul.f32 -1.442695, %v1474_v53  ;;  %v1482_v45 = vrot.slane %v1474_v53, 6  ;;  %v4005_v53 = vld [vmem:[#allocation21_spill] sm:$0xff] }
 0x502   :  { %2274 = vpow2.f32 %v2171_v63  ;;  %v4013_v63 = vld [vmem:[#allocation29_spill] sm:$0xff] }
 0x50f   :  { %v2275_v25 = vpop.eup %2274 }
 0x510   :  { %v1478_v32 = vadd.f32 1.0, %v2275_v25  ;;  %v4008_v25 = vld [vmem:[#allocation24_spill] sm:$0xff] }
 0x512   :  { %2276 = vrcp.f32 %v1478_v32  ;;  %v4004_v32 = vld [vmem:[#allocation20_spill] sm:$0xff] }
 0x513   :  { %2278 = vtanh.f32 %v1482_v45  ;;  %v4009_v45 = vld [vmem:[#allocation25_spill] sm:$0xff] }
 0x51f   :  { %v2277_v37 = vpop.eup %2276 }
 0x520   :  { %v1486_v47 = vrot.slane %v2277_v37, 2  ;;  %v2279_v19 = vpop.eup %2278  ;;  %v1492_v5 = vrot.slane %v2277_v37, 4 }
 0x521   :  { %v1489_v38 = vmul.f32 %v2279_v19, %v2277_v37  ;;  %v4003_v37 = vld [vmem:[#allocation19_spill] sm:$0xff]  ;;  %v4014_v19 = vld [vmem:[#allocation30_spill] sm:$0xff] }
 0x522   :  { %v1488_v8 = vmul.f32 %v1486_v47, %v3362_v60  ;;  %v4001_v60 = vld [vmem:[#allocation17_spill] sm:$0xff]  ;;  %v4002_v47 = vld [vmem:[#allocation18_spill] sm:$0xff] }
 0x524   :  { %v3437_v4 = vadd.f32 %v1489_v38, %v1488_v8  ;;  %v4015_v38 = vld [vmem:[#allocation31_spill] sm:$0xff]  ;;  %v4016_v8 = vld [vmem:[#allocation32_spill] sm:$0xff] }
 0x526   :  { %2280 = vtanh.f32 %v3437_v4 }
 0x533   :  { %v2281_v0 = vpop.eup %2280 }
 0x534   :  { %v1494_v2 = vmul.f32 %v2281_v0, %v1492_v5  ;;  %v4017_v5 = vld [vmem:[#allocation33_spill] sm:$0xff]  ;;  %v4018_v0 = vld [vmem:[#allocation34_spill] sm:$0xff] }
 0x536   :  { %1562 = vmatmul.mubr.f32.vlgmr.msra.gmra.mxu0 %v1494_v2  ;;  %1633 = vmatmul.mubr.f32.vlgmr.msra.gmra.mxu1 %v1494_v2  ;;  %v4019_v2 = vmov 0.0  }
 0x537   :  { %1685 = vmatpush1.msra.mxu0 %v3091_v16  ;;  %1756 = vmatpush1.msra.mxu1 %v3094_v17 }
 0x538   :  { %1686 = vmatprep.subr.mxu0 %v3097_v18  ;;  %1757 = vmatprep.subr.mxu1 %v3100_v58 }
 0x539   :  { %1687 = vmatpush1.msra.mxu0 %v3103_v20  ;;  %1758 = vmatpush1.msra.mxu1 %v3106_v56 }
 0x53a   :  { %1688 = vmatprep.subr.mxu0 %v3109_v24  ;;  %1759 = vmatprep.subr.mxu1 %v3112_v55 }
 0x53b   :  { %1689 = vmatpush1.msra.mxu0 %v3115_v50  ;;  %1760 = vmatpush1.msra.mxu1 %v3118_v54 }
 0x53c   :  { %1690 = vmatprep.subr.mxu0 %v3121_v3  ;;  %1761 = vmatprep.subr.mxu1 %v3124_v48 }
 0x53d   :  { %1691 = vmatpush1.msra.mxu0 %v3127_v44  ;;  %1762 = vmatpush1.msra.mxu1 %v3130_v35 }
 0x53e   :  { %1692 = vmatprep.subr.mxu0 %v3133_v43  ;;  %1763 = vmatprep.subr.mxu1 %v3136_v57 }
 0x53f   :  { %1693 = vmatpush1.msra.mxu0 %v3139_v42  ;;  %1764 = vmatpush1.msra.mxu1 %v3142_v40 }
 0x540   :  { %1694 = vmatprep.subr.mxu0 %v3145_v41  ;;  %1765 = vmatprep.subr.mxu1 %v3148_v23 }
 0x541   :  { %1695 = vmatpush1.msra.mxu0 %v3151_v29  ;;  %1766 = vmatpush1.msra.mxu1 %v3154_v46 }
 0x542   :  { %1696 = vmatprep.subr.mxu0 %v3157_v49  ;;  %1767 = vmatprep.subr.mxu1 %v3160_v11 }
 0x543   :  { %1697 = vmatpush1.msra.mxu0 %v3163_v13  ;;  %1768 = vmatpush1.msra.mxu1 %v3166_v14 }
 0x544   :  { %1698 = vmatprep.subr.mxu0 %v3169_v15  ;;  %1769 = vmatprep.subr.mxu1 %v3172_v39 }
 0x545   :  { %1699 = vmatpush1.msra.mxu0 %v3175_v34  ;;  %1770 = vmatpush1.msra.mxu1 %v3178_v21 }
 0x546   :  { %1700 = vmatprep.subr.mxu0 %v3181_v30  ;;  %1771 = vmatprep.subr.mxu1 %v3184_v28 }
 0x547   :  { %1701 = vmatpush1.msra.mxu0 %v3187_v33  ;;  %1772 = vmatpush1.msra.mxu1 %v3190_v26 }
 0x548   :  { %1702 = vmatprep.subr.mxu0 %v3193_v51  ;;  %1773 = vmatprep.subr.mxu1 %v3196_v61 }
 0x549   :  { %1703 = vmatpush1.msra.mxu0 %v3199_v31  ;;  %1774 = vmatpush1.msra.mxu1 %v3951_v6 }
 0x54a   :  { %1704 = vmatprep.subr.mxu0 %v3952_v9  ;;  %1775 = vmatprep.subr.mxu1 %v3953_v10 }
 0x54b   :  { %1705 = vmatpush1.msra.mxu0 %v3954_v12  ;;  %1776 = vmatpush1.msra.mxu1 %v3955_v22 }
 0x54c   :  { %1706 = vmatprep.subr.mxu0 %v3217_v62  ;;  %1777 = vmatprep.subr.mxu1 %v4001_v60 }
 0x54d   :  { %1707 = vmatpush1.msra.mxu0 %v4002_v47  ;;  %1778 = vmatpush1.msra.mxu1 %v4003_v37 }
 0x54e   :  { %1708 = vmatprep.subr.mxu0 %v4004_v32  ;;  %1779 = vmatprep.subr.mxu1 %v4005_v53  ;;  %v4024_v53 = vld [vmem:[#allocation66_spill] sm:$0xff] }
 0x54f   :  { %1709 = vmatpush1.msra.mxu0 %v4006_v59  ;;  %1780 = vmatpush1.msra.mxu1 %v4007_v27  ;;  %v4023_v59 = vld [vmem:[#allocation65_spill] sm:$0xff] }
 0x550   :  { %1710 = vmatprep.subr.mxu0 %v4008_v25  ;;  %1781 = vmatprep.subr.mxu1 %v4009_v45  ;;  %v4020_v45 = vld [vmem:[#allocation35_spill] sm:$0xff] }
 0x551   :  { %1711 = vmatpush1.msra.mxu0 %v4010_v7  ;;  %1782 = vmatpush1.msra.mxu1 %v4011_v52  ;;  %v4021_v52 = vld [vmem:[#allocation10_spill] sm:$0xff] }
 0x552   :  { %1712 = vmatprep.subr.mxu0 %v4012_v1  ;;  %1783 = vmatprep.subr.mxu1 %v4013_v63  ;;  %v4022_v1 = vld [vmem:[#allocation11_spill] sm:$0xff] }
 0x553   :  { %1713 = vmatpush1.msra.mxu0 %v4014_v19  ;;  %1784 = vmatpush1.msra.mxu1 %v4015_v38 }
 0x554   :  { %1714 = vmatprep.subr.mxu0 %v4016_v8  ;;  %1785 = vmatprep.subr.mxu1 %v4017_v5 }
 0x555   :  { %1715 = vmatpush1.msra.mxu0 %v4018_v0  ;;  %1748 = vmatprep.mubr.f32.mxu0 %v4019_v2 }
 0x556   :  { %1786 = vmatpush1.msra.mxu1 %v4020_v45  ;;  %1819 = vmatprep.mubr.f32.mxu1 %v4019_v2  ;;  %v4025_v45 = vcombine.low %v4023_v59, %v4024_v53 }
 0x557   :  { %1871 = vmatprep.subr.mxu0 %v4021_v52  ;;  %1942 = vmatprep.subr.mxu1 %v4022_v1 }
 0x5f6   :  { %v1563_v63 = vpop.f32.mrf.mxu0  ;;  %v1634_v19 = vpop.f32.mrf.mxu1 }
 0x5f8   :  { %v1565_v7 = vpop.f32.mrf.mxu0  ;;  %v1636_v38 = vpop.f32.mrf.mxu1 }
 0x5f9   :  { %v1643_v25 = vcombine.low %v1563_v63, %v1565_v7  ;;  %v1644_v8 = vcombine.low %v1634_v19, %v1636_v38 }
 0x5fb   :  { %v1651_v5 = vrot.slane %v1643_v25, %v2823_v36  ;;  %v1658_v0 = vrot.slane %v1644_v8, %v2823_v36  ;;  %v2067_v8 = vld [vmem:[%s3669_s4 + $0x58] sm:$0xff] }
 0x5fd   :  { %v1659_v27 = vcombine.low %v1651_v5, %v1658_v0  ;;  %v2066_v5 = vld [vmem:[%s3669_s4 + $0x50] sm:$0xff]  ;;  %v2065_v0 = vld [vmem:[%s3669_s4 + $0x48] sm:$0xff] }
 0x5ff   :  { %v1661_v32 = vadd.f32 %v1659_v27, %v4025_v45  ;;  %v2069_v27 = vld [vmem:[%s3669_s4 + $0x68] sm:$0xff]  ;;  %v2068_v45 = vld [vmem:[%s3669_s4 + $0x60] sm:$0xff] }
 0x601   :  { %v2172_v2 = vmul.f32 -1.442695, %v1661_v32  ;;  %v1669_v1 = vrot.slane %v1661_v32, 6  ;;  %v2070_v32 = vld [vmem:[%s3669_s4 + $0x70] sm:$0xff] }
 0x603   :  { %2282 = vpow2.f32 %v2172_v2  ;;  %v2064_v2 = vld [vmem:[%s3669_s4 + $0x40] sm:$0xff] }
 0x610   :  { %v2283_v52 = vpop.eup %2282 }
 0x611   :  { %v1665_v37 = vadd.f32 1.0, %v2283_v52  ;;  %v2063_v52 = vld [vmem:[%s3669_s4 + $0x38] sm:$0xff] }
 0x613   :  { %2284 = vrcp.f32 %v1665_v37  ;;  %v2071_v37 = vld [vmem:[%s3669_s4 + $0x78] sm:$0xff] }
 0x614   :  { %2286 = vtanh.f32 %v1669_v1  ;;  %v2062_v1 = vld [vmem:[%s3669_s4 + $0x30] sm:$0xff] }
 0x620   :  { %v2285_v47 = vpop.eup %2284 }
 0x621   :  { %v1673_v60 = vrot.slane %v2285_v47, 2  ;;  %v2287_v7 = vpop.eup %2286  ;;  %v1679_v38 = vrot.slane %v2285_v47, 4 }
 0x622   :  { %v1676_v63 = vmul.f32 %v2287_v7, %v2285_v47  ;;  %v2061_v7 = vld [vmem:[%s3669_s4 + $0x28] sm:$0xff] }
 0x623   :  { %v1675_v25 = vmul.f32 %v1673_v60, %v3437_v4 }
 0x625   :  { %v3512_v19 = vadd.f32 %v1676_v63, %v1675_v25  ;;  %v2060_v63 = vld [vmem:[%s3669_s4 + $0x20] sm:$0xff]  ;;  %v2059_v25 = vld [vmem:[%s3669_s4 + $0x18] sm:$0xff] }
 0x627   :  { %2288 = vtanh.f32 %v3512_v19 }
 0x634   :  { %v2289_v53 = vpop.eup %2288 }
 0x635   :  { %v1681_v59 = vmul.f32 %v2289_v53, %v1679_v38  ;;  %v2057_v38 = vld [vmem:[%s3669_s4 + $0x8] sm:$0xff]  ;;  %v2056_v53 = vld [vmem:[%s3669_s4] sm:$0xff] }
 0x637   :  { %1749 = vmatmul.mubr.f32.vlgmr.msra.gmra.mxu0 %v1681_v59  ;;  %1820 = vmatmul.mubr.f32.vlgmr.msra.gmra.mxu1 %v1681_v59 }
 0x638   :  { %1872 = vmatpush1.msra.mxu0 %v3091_v16  ;;  %1943 = vmatpush1.msra.mxu1 %v3094_v17  ;;  %v4037_v16 = vld [vmem:[#allocation28_spill] sm:$0xff]  ;;  %v4038_v17 = vld [vmem:[#allocation29_spill] sm:$0xff] }
 0x639   :  { %1873 = vmatprep.subr.mxu0 %v3097_v18  ;;  %1944 = vmatprep.subr.mxu1 %v3100_v58  ;;  %v4039_v18 = vld [vmem:[#allocation30_spill] sm:$0xff]  ;;  %v4040_v58 = vld [vmem:[#allocation31_spill] sm:$0xff] }
 0x63a   :  { %1874 = vmatpush1.msra.mxu0 %v3103_v20  ;;  %1945 = vmatpush1.msra.mxu1 %v3106_v56  ;;  %v4041_v20 = vld [vmem:[#allocation32_spill] sm:$0xff]  ;;  %v4042_v56 = vld [vmem:[#allocation33_spill] sm:$0xff] }
 0x63b   :  { %1875 = vmatprep.subr.mxu0 %v3109_v24  ;;  %1946 = vmatprep.subr.mxu1 %v3112_v55  ;;  %v4043_v24 = vld [vmem:[#allocation34_spill] sm:$0xff]  ;;  %v4044_v55 = vmov 0.0  }
 0x63c   :  { %1876 = vmatpush1.msra.mxu0 %v3115_v50  ;;  %1947 = vmatpush1.msra.mxu1 %v3118_v54  ;;  %v4045_v50 = vld [vmem:[#allocation35_spill] sm:$0xff] }
 0x63d   :  { %1877 = vmatprep.subr.mxu0 %v3121_v3  ;;  %1948 = vmatprep.subr.mxu1 %v3124_v48 }
 0x63e   :  { %1878 = vmatpush1.msra.mxu0 %v3127_v44  ;;  %1949 = vmatpush1.msra.mxu1 %v3130_v35 }
 0x63f   :  { %1879 = vmatprep.subr.mxu0 %v3133_v43  ;;  %1950 = vmatprep.subr.mxu1 %v3136_v57 }
 0x640   :  { %1880 = vmatpush1.msra.mxu0 %v3139_v42  ;;  %1951 = vmatpush1.msra.mxu1 %v3142_v40 }
 0x641   :  { %1881 = vmatprep.subr.mxu0 %v3145_v41  ;;  %1952 = vmatprep.subr.mxu1 %v3148_v23  ;;  %v4046_v41 = vld [vmem:[#allocation67_spill] sm:$0xff]  ;;  %v4047_v23 = vld [vmem:[#allocation68_spill] sm:$0xff] }
 0x642   :  { %1882 = vmatpush1.msra.mxu0 %v3151_v29  ;;  %1953 = vmatpush1.msra.mxu1 %v3154_v46  ;;  %v4048_v29 = vcombine.low %v4046_v41, %v4047_v23 }
 0x643   :  { %1883 = vmatprep.subr.mxu0 %v3157_v49  ;;  %1954 = vmatprep.subr.mxu1 %v3160_v11 }
 0x644   :  { %1884 = vmatpush1.msra.mxu0 %v3163_v13  ;;  %1955 = vmatpush1.msra.mxu1 %v3166_v14 }
 0x645   :  { %1885 = vmatprep.subr.mxu0 %v3169_v15  ;;  %1956 = vmatprep.subr.mxu1 %v3172_v39  ;;  %v4035_v39 = vld [vmem:[#allocation26_spill] sm:$0xff] }
 0x646   :  { %1886 = vmatpush1.msra.mxu0 %v3175_v34  ;;  %1957 = vmatpush1.msra.mxu1 %v3178_v21  ;;  %v4033_v21 = vld [vmem:[#allocation24_spill] sm:$0xff]  ;;  %v4034_v34 = vld [vmem:[#allocation25_spill] sm:$0xff] }
 0x647   :  { %1887 = vmatprep.subr.mxu0 %v3181_v30  ;;  %1958 = vmatprep.subr.mxu1 %v3184_v28  ;;  %v4027_v28 = vld [vmem:[#allocation18_spill] sm:$0xff]  ;;  %v4028_v30 = vld [vmem:[#allocation19_spill] sm:$0xff] }
 0x648   :  { %1888 = vmatpush1.msra.mxu0 %v3187_v33  ;;  %1959 = vmatpush1.msra.mxu1 %v3190_v26  ;;  %v4026_v33 = vld [vmem:[#allocation17_spill] sm:$0xff]  ;;  %v4032_v26 = vld [vmem:[#allocation23_spill] sm:$0xff] }
 0x649   :  { %1889 = vmatprep.subr.mxu0 %v3193_v51  ;;  %1960 = vmatprep.subr.mxu1 %v3196_v61  ;;  %v4029_v61 = vld [vmem:[#allocation20_spill] sm:$0xff]  ;;  %v4031_v51 = vld [vmem:[#allocation22_spill] sm:$0xff] }
 0x64a   :  { %1890 = vmatpush1.msra.mxu0 %v3199_v31  ;;  %1961 = vmatpush1.msra.mxu1 %v3951_v6  ;;  %v4030_v31 = vld [vmem:[#allocation21_spill] sm:$0xff] }
 0x64b   :  { %1891 = vmatprep.subr.mxu0 %v3952_v9  ;;  %1962 = vmatprep.subr.mxu1 %v3953_v10 }
 0x64c   :  { %1892 = vmatpush1.msra.mxu0 %v3954_v12  ;;  %1963 = vmatpush1.msra.mxu1 %v3955_v22 }
 0x64d   :  { %1893 = vmatprep.subr.mxu0 %v3217_v62  ;;  %1964 = vmatprep.subr.mxu1 %v4026_v33  ;;  %v4036_v62 = vld [vmem:[#allocation27_spill] sm:$0xff] }
 0x64e   :  { %1894 = vmatpush1.msra.mxu0 %v4027_v28  ;;  %1965 = vmatpush1.msra.mxu1 %v4028_v30 }
 0x64f   :  { %1895 = vmatprep.subr.mxu0 %v4029_v61  ;;  %1966 = vmatprep.subr.mxu1 %v4030_v31 }
 0x650   :  { %1896 = vmatpush1.msra.mxu0 %v4031_v51  ;;  %1967 = vmatpush1.msra.mxu1 %v4032_v26 }
 0x651   :  { %1897 = vmatprep.subr.mxu0 %v4033_v21  ;;  %1968 = vmatprep.subr.mxu1 %v4034_v34  ;;  %v4049_v34 = vld [vmem:[#allocation69_spill] sm:$0xff] }
 0x652   :  { %1898 = vmatpush1.msra.mxu0 %v4035_v39  ;;  %1969 = vmatpush1.msra.mxu1 %v4036_v62  ;;  %v4050_v39 = vld [vmem:[#allocation70_spill] sm:$0xff] }
 0x653   :  { %1899 = vmatprep.subr.mxu0 %v4037_v16  ;;  %1970 = vmatprep.subr.mxu1 %v4038_v17  ;;  %v4051_v62 = vcombine.low %v4049_v34, %v4050_v39 }
 0x654   :  { %1900 = vmatpush1.msra.mxu0 %v4039_v18  ;;  %1971 = vmatpush1.msra.mxu1 %v4040_v58 }
 0x655   :  { %1901 = vmatprep.subr.mxu0 %v4041_v20  ;;  %1972 = vmatprep.subr.mxu1 %v4042_v56 }
 0x656   :  { %1902 = vmatpush1.msra.mxu0 %v4043_v24  ;;  %1935 = vmatprep.mubr.f32.mxu0 %v4044_v55 }
 0x657   :  { %1973 = vmatpush1.msra.mxu1 %v4045_v50  ;;  %2006 = vmatprep.mubr.f32.mxu1 %v4044_v55 }
 0x658   :  { %2193 = vmatprep.subr.mxu0 %v4044_v55 }
 0x6f7   :  { %v1750_v54 = vpop.f32.mrf.mxu0  ;;  %v1821_v3 = vpop.f32.mrf.mxu1 }
 0x6f9   :  { %v1752_v48 = vpop.f32.mrf.mxu0  ;;  %v1823_v44 = vpop.f32.mrf.mxu1 }
 0x6fa   :  { %v1830_v35 = vcombine.low %v1750_v54, %v1752_v48  ;;  %v1831_v43 = vcombine.low %v1821_v3, %v1823_v44 }
 0x6fc   :  { %v1838_v57 = vrot.slane %v1830_v35, %v2823_v36  ;;  %v1845_v42 = vrot.slane %v1831_v43, %v2823_v36  ;;  %v2175_v35 = vld [vmem:[%s3670_s5] ss:$0 sm:$0xff] }
 0x6fe   :  { %v1846_v40 = vcombine.low %v1838_v57, %v1845_v42 }
 0x700   :  { %v1848_v46 = vadd.f32 %v1846_v40, %v4048_v29 }
 0x702   :  { %v2173_v49 = vmul.f32 -1.442695, %v1848_v46  ;;  %v1856_v14 = vrot.slane %v1848_v46, 6 }
 0x704   :  { %2290 = vpow2.f32 %v2173_v49 }
 0x711   :  { %v2291_v11 = vpop.eup %2290 }
 0x712   :  { %v1852_v13 = vadd.f32 1.0, %v2291_v11 }
 0x714   :  { %2292 = vrcp.f32 %v1852_v13 }
 0x715   :  { %2294 = vtanh.f32 %v1856_v14 }
 0x721   :  { %v2293_v15 = vpop.eup %2292 }
 0x722   :  { %v1860_v6 = vrot.slane %v2293_v15, 2  ;;  %v2295_v9 = vpop.eup %2294  ;;  %v1866_v4 = vrot.slane %v2293_v15, 4 }
 0x723   :  { %v1863_v10 = vmul.f32 %v2295_v9, %v2293_v15 }
 0x724   :  { %v1862_v12 = vmul.f32 %v1860_v6, %v3512_v19  ;;  %v2058_v19 = vld [vmem:[%s3669_s4 + $0x10] sm:$0xff] }
 0x726   :  { %v3586_v22 = vadd.f32 %v1863_v10, %v1862_v12 }
 0x728   :  { %2296 = vtanh.f32 %v3586_v22 }
 0x735   :  { %v2297_v60 = vpop.eup %2296 }
 0x736   :  { %v1868_v47 = vmul.f32 %v2297_v60, %v1866_v4 }
 0x738   :  { %1936 = vmatmul.mubr.f32.vlgmr.msra.gmra.mxu0 %v1868_v47  ;;  %2007 = vmatmul.mubr.f32.vlgmr.msra.gmra.mxu1 %v1868_v47 }
 0x739   :  { %2194 = vmatpush3.msra.mxu0 %v2071_v37  ;;  %2225 = vmatprep.mubr.msk.f32.mxu0 %vm2421_vm0, %v4044_v55 }
 0x73a   :  { %2195 = vmatprep.subr.mxu0 %v4044_v55 }
 0x73b   :  { %2196 = vmatpush3.msra.mxu0 %v2070_v32 }
 0x73c   :  { %2197 = vmatprep.subr.mxu0 %v4044_v55 }
 0x73d   :  { %2198 = vmatpush3.msra.mxu0 %v2069_v27 }
 0x73e   :  { %2199 = vmatprep.subr.mxu0 %v4044_v55 }
 0x73f   :  { %2200 = vmatpush3.msra.mxu0 %v2068_v45 }
 0x740   :  { %2201 = vmatprep.subr.mxu0 %v4044_v55 }
 0x741   :  { %2202 = vmatpush3.msra.mxu0 %v2067_v8 }
 0x742   :  { %2203 = vmatprep.subr.mxu0 %v4044_v55 }
 0x743   :  { %2204 = vmatpush3.msra.mxu0 %v2066_v5 }
 0x744   :  { %2205 = vmatprep.subr.mxu0 %v4044_v55 }
 0x745   :  { %2206 = vmatpush3.msra.mxu0 %v2065_v0 }
 0x746   :  { %2207 = vmatprep.subr.mxu0 %v4044_v55 }
 0x747   :  { %2208 = vmatpush3.msra.mxu0 %v2064_v2 }
 0x748   :  { %2209 = vmatprep.subr.mxu0 %v4044_v55 }
 0x749   :  { %2210 = vmatpush3.msra.mxu0 %v2063_v52 }
 0x74a   :  { %2211 = vmatprep.subr.mxu0 %v4044_v55 }
 0x74b   :  { %2212 = vmatpush3.msra.mxu0 %v2062_v1 }
 0x74c   :  { %2213 = vmatprep.subr.mxu0 %v4044_v55 }
 0x74d   :  { %2214 = vmatpush3.msra.mxu0 %v2061_v7 }
 0x74e   :  { %2215 = vmatprep.subr.mxu0 %v4044_v55 }
 0x74f   :  { %2216 = vmatpush3.msra.mxu0 %v2060_v63 }
 0x750   :  { %2217 = vmatprep.subr.mxu0 %v4044_v55 }
 0x751   :  { %2218 = vmatpush3.msra.mxu0 %v2059_v25 }
 0x752   :  { %2219 = vmatprep.subr.mxu0 %v4044_v55 }
 0x753   :  { %2220 = vmatpush3.msra.mxu0 %v2058_v19 }
 0x754   :  { %2221 = vmatprep.subr.mxu0 %v4044_v55 }
 0x755   :  { %2222 = vmatpush3.msra.mxu0 %v2057_v38 }
 0x756   :  { %2223 = vmatprep.subr.mxu0 %v4044_v55 }
 0x757   :  { %2224 = vmatpush3.msra.mxu0 %v2056_v53 }
 0x7f8   :  { %v1937_v59 = vpop.f32.mrf.mxu0  ;;  %v2008_v33 = vpop.f32.mrf.mxu1 }
 0x7fa   :  { %v1939_v28 = vpop.f32.mrf.mxu0  ;;  %v2010_v30 = vpop.f32.mrf.mxu1 }
 0x7fb   :  { %v2017_v61 = vcombine.low %v1937_v59, %v1939_v28  ;;  %v2018_v31 = vcombine.low %v2008_v33, %v2010_v30 }
 0x7fd   :  { %v2025_v51 = vrot.slane %v2017_v61, %v2823_v36  ;;  %v2032_v26 = vrot.slane %v2018_v31, %v2823_v36 }
 0x7ff   :  { %v2033_v21 = vcombine.low %v2025_v51, %v2032_v26 }
 0x801   :  { %v2035_v16 = vadd.f32 %v2033_v21, %v4051_v62 }
 0x803   :  { %v2174_v17 = vmul.f32 -1.442695, %v2035_v16  ;;  %v2043_v20 = vrot.slane %v2035_v16, 6 }
 0x805   :  { %2298 = vpow2.f32 %v2174_v17 }
 0x812   :  { %v2299_v18 = vpop.eup %2298 }
 0x813   :  { %v2039_v58 = vadd.f32 1.0, %v2299_v18 }
 0x815   :  { %2300 = vrcp.f32 %v2039_v58 }
 0x816   :  { %2302 = vtanh.f32 %v2043_v20 }
 0x822   :  { %v2301_v56 = vpop.eup %2300 }
 0x823   :  { %v2047_v24 = vrot.slane %v2301_v56, 2  ;;  %v2303_v55 = vpop.eup %2302  ;;  %v2053_v36 = vrot.slane %v2301_v56, 4 }
 0x824   :  { %v2050_v50 = vmul.f32 %v2303_v55, %v2301_v56 }
 0x825   :  { %v2049_v54 = vmul.f32 %v2047_v24, %v3586_v22 }
 0x827   :  { %v2051_v3 = vadd.f32 %v2050_v50, %v2049_v54 }
 0x829   :  { %2304 = vtanh.f32 %v2051_v3 }
 0x836   :  { %v2305_v48 = vpop.eup %2304 }
 0x837   :  { %v2055_v44 = vmul.f32 %v2305_v48, %v2053_v36 }
 0x839   :  { %2226 = vmatmul.mubr.f32.vlgmr.msra.gmra.mxu0 %v2055_v44 }
 0x8f9   :  { %v2145_v43 = vpop.f32.mrf.mxu0 }
 0x8fa   :  { %v2146_v57 = vadd.f32 %v2175_v35, %v2145_v43 }
 0x8fb   :  { %v2227_v42 = vpop.f32.mrf.mxu0 }
 0x8fc   :  { %2150 = vst.msk [vmem:[#allocation6] sm:$0x3] %vm2149_vm1, %v2146_v57 }
 0x8fd   :  { %2401 = shalt.err (!%p2398_p9)
}
 0x8fe   :  { %2160 = dma.vmem_to_hbm [thread:$0]  %s2158_s2, 32, %s3671_s6, [#allocation5]  }
 0x8ff   :  { %2412 = dma.done.wait [#allocation5], 32  }
 0x900   :  { %2413 = vsyncadd [#allocation5], 4294967264 }
 0x901   :  { %2164 = vsyncpa [#allocation4], 1 }
 0x902   :  { %2165 = vsyncpa [#allocation5], 1 }

</bundles_post_ra>
